<compile_context>
chip_gen: v6e
topology: v6e:2x2x1
jax: 0.10.0
libtpu: 0.0.40
codegen_flags: <defaults>
</compile_context>

<pallas_src>
import functools

import jax
import jax.numpy as jnp
from jax import lax
from jax.experimental import pallas as pl
from jax.experimental.pallas import tpu as pltpu


# ---------------------------------------------------------------------------
# Pallas kernel: one DetrEncoderLayer for one (batch, query-tile) grid step
# ---------------------------------------------------------------------------
def _encoder_layer_kernel(
    hs_ref, pos_ref,
    wq_ref, bq_ref, wk_ref, bk_ref, wv_ref, bv_ref, wo_ref, bo_ref,
    ln1_g_ref, ln1_b_ref,
    w1_ref, b1_ref, w2_ref, b2_ref,
    ln2_g_ref, ln2_b_ref,
    out_ref,
    kh_ref, vh_ref,                       # VMEM scratch: cached K/V (per head)
    *, num_heads, head_dim, eps, q_tile, seq_valid,
):
    f32 = jnp.float32
    bf16 = jnp.bfloat16
    H, hd = num_heads, head_dim
    s_pad = hs_ref.shape[1]
    t = pl.program_id(1)

    # --- K/V projections once per batch element (first query tile only) -----
    @pl.when(t == 0)
    def _():
        hs_all = hs_ref[0]                       # (S_pad, D) f32
        pos_all = pos_ref[0]
        xk = (hs_all + pos_all).astype(bf16)     # keys get positional embeds
        xv = hs_all.astype(bf16)                 # values do not
        k = jnp.dot(xk, wk_ref[...], preferred_element_type=f32) + bk_ref[...]
        v = jnp.dot(xv, wv_ref[...], preferred_element_type=f32) + bv_ref[...]
        # single reshape + transpose to head-split layout (H, S_pad, hd)
        kh_ref[...] = jnp.transpose(k.astype(bf16).reshape(s_pad, H, hd), (1, 0, 2))
        vh_ref[...] = jnp.transpose(v.astype(bf16).reshape(s_pad, H, hd), (1, 0, 2))

    # --- query tile sliced from the single full-S input stream --------------
    q0 = pl.multiple_of(t * q_tile, q_tile)
    hs_q = hs_ref[0, pl.ds(q0, q_tile), :]       # (TQ, D) f32 — residual path
    pos_q = pos_ref[0, pl.ds(q0, q_tile), :]     # (TQ, D)

    xq = (hs_q + pos_q).astype(bf16)
    scaling = jnp.float32(head_dim ** 0.5)       # spec: q_proj(x) * head_dim**0.5
    q = (jnp.dot(xq, wq_ref[...], preferred_element_type=f32) + bq_ref[...]) * scaling
    qh = jnp.transpose(q.astype(bf16).reshape(q_tile, H, hd), (1, 0, 2))  # (H,TQ,hd)

    # --- batched per-head attention, normalize AFTER the PV matmul ----------
    s = jnp.einsum("hqd,hkd->hqk", qh, kh_ref[...],
                   preferred_element_type=f32)                 # (H, TQ, S_pad)
    if seq_valid < s_pad:                                      # static branch
        key_ok = lax.broadcasted_iota(jnp.int32, (1, 1, s_pad), 2) < seq_valid
        s = jnp.where(key_ok, s, jnp.float32(-1e30))
    s = s - jnp.max(s, axis=-1, keepdims=True)
    e = jnp.exp(s)
    denom = jnp.sum(e, axis=-1, keepdims=True)                 # (H, TQ, 1)
    ctx = jnp.einsum("hqk,hkd->hqd", e.astype(bf16), vh_ref[...],
                     preferred_element_type=f32)               # (H, TQ, hd)
    ctx = ctx * pl.reciprocal(denom, approx=True)              # EUP slot

    attn = jnp.transpose(ctx, (1, 0, 2)).reshape(q_tile, H * hd)  # (TQ, D)
    attn = jnp.dot(attn.astype(bf16), wo_ref[...],
                   preferred_element_type=f32) + bo_ref[...]

    # --- residual + self_attn_norm (f32) -------------------------------------
    h1 = hs_q + attn
    mu = jnp.mean(h1, axis=-1, keepdims=True)
    var = jnp.mean(jnp.square(h1 - mu), axis=-1, keepdims=True)
    h1 = (h1 - mu) * lax.rsqrt(var + eps) * ln1_g_ref[...] + ln1_b_ref[...]

    # --- feed-forward (ReLU, DETR default) -----------------------------------
    f = jnp.dot(h1.astype(bf16), w1_ref[...], preferred_element_type=f32) + b1_ref[...]
    f = jnp.maximum(f, 0.0)
    f = jnp.dot(f.astype(bf16), w2_ref[...], preferred_element_type=f32) + b2_ref[...]

    # --- residual + final_layer_norm -----------------------------------------
    h2 = h1 + f
    mu2 = jnp.mean(h2, axis=-1, keepdims=True)
    var2 = jnp.mean(jnp.square(h2 - mu2), axis=-1, keepdims=True)
    out_ref[0] = ((h2 - mu2) * lax.rsqrt(var2 + eps)
                  * ln2_g_ref[...] + ln2_b_ref[...]).astype(out_ref.dtype)


# ---------------------------------------------------------------------------
# Tiling / BlockSpec helpers
# ---------------------------------------------------------------------------
def _choose_tiling(seq_len, max_q_tile=128):
    """Pick (q_tile, padded_seq_len) so q_tile is (8,*)-legal and divides S_pad."""
    if seq_len <= max_q_tile:
        s_pad = max(8, -(-seq_len // 8) * 8)     # round up to multiple of 8
        return s_pad, s_pad                      # one tile
    tq = max_q_tile
    s_pad = -(-seq_len // tq) * tq
    return tq, s_pad


def _single_buffered(block_shape, index_map):
    """BlockSpec with single buffering for blocks that are constant along the
    q-tile axis (weights / per-batch full-S activations). Falls back to the
    default spec if this JAX version has no pipeline_mode support."""
    buffered = getattr(pl, "Buffered", None)
    if buffered is not None:
        try:
            return pl.BlockSpec(block_shape, index_map, pipeline_mode=buffered(1))
        except TypeError:
            pass
    return pl.BlockSpec(block_shape, index_map)


# ---------------------------------------------------------------------------
# Wrapper: one encoder layer
# ---------------------------------------------------------------------------
def detr_encoder_layer(hidden_states, object_queries, params, *,
                       num_heads, eps=1e-5, max_q_tile=128):
    """One DetrEncoderLayer via a Pallas kernel. hidden_states: (B, S, D) f32."""
    B, S, D = hidden_states.shape
    F = params["w1"].shape[1]
    head_dim = D // num_heads
    tq, s_pad = _choose_tiling(S, max_q_tile)
    n_q = s_pad // tq

    if s_pad != S:
        pad = [(0, 0), (0, s_pad - S), (0, 0)]
        hs_in = jnp.pad(hidden_states, pad)
        pos_in = jnp.pad(object_queries, pad)
    else:
        hs_in, pos_in = hidden_states, object_queries

    bf16 = jnp.bfloat16
    # bf16 weights: MXU throughput + halved weight traffic / VMEM footprint;
    # biases / LayerNorm params stay f32 (added after f32 accumulation).
    wq = params["wq"].astype(bf16)
    wk = params["wk"].astype(bf16)
    wv = params["wv"].astype(bf16)
    wo = params["wo"].astype(bf16)
    w1 = params["w1"].astype(bf16)
    w2 = params["w2"].astype(bf16)

    # Per-batch full-sequence activation blocks (constant along the t axis).
    seq_spec = _single_buffered((1, s_pad, D), lambda b, t: (b, 0, 0))
    # Constant weight / bias blocks.
    mat_dd = _single_buffered((D, D), lambda b, t: (0, 0))
    vec_d = _single_buffered((1, D), lambda b, t: (0, 0))
    mat_df = _single_buffered((D, F), lambda b, t: (0, 0))
    vec_f = _single_buffered((1, F), lambda b, t: (0, 0))
    mat_fd = _single_buffered((F, D), lambda b, t: (0, 0))
    out_spec = pl.BlockSpec((1, tq, D), lambda b, t: (b, t, 0))

    kernel = functools.partial(
        _encoder_layer_kernel, num_heads=num_heads, head_dim=head_dim,
        eps=eps, q_tile=tq, seq_valid=S)

    # TODO(synk): prefetch next-layer weights across pallas_call boundaries
    # (P10 semaphore/VMEM futures) so the ~2 MiB per-layer weight DMA hides
    # behind the previous layer's compute.
    out = pl.pallas_call(
        kernel,
        out_shape=jax.ShapeDtypeStruct((B, s_pad, D), jnp.float32),
        grid_spec=pltpu.PrefetchScalarGridSpec(
            num_scalar_prefetch=0,
            grid=(B, n_q),
            in_specs=[
                seq_spec, seq_spec,              # hidden_states, object_queries
                mat_dd, vec_d, mat_dd, vec_d,    # q_proj, k_proj
                mat_dd, vec_d, mat_dd, vec_d,    # v_proj, out_proj
                vec_d, vec_d,                    # self_attn_norm gamma/beta
                mat_df, vec_f, mat_fd, vec_d,    # fc1, fc2
                vec_d, vec_d,                    # final_layer_norm gamma/beta
            ],
            out_specs=out_spec,
            scratch_shapes=[
                pltpu.VMEM((num_heads, s_pad, head_dim), jnp.bfloat16),  # kh
                pltpu.VMEM((num_heads, s_pad, head_dim), jnp.bfloat16),  # vh
            ],
        ),
        compiler_params=pltpu.CompilerParams(
            # q-tile axis is "arbitrary": it reuses the per-batch K/V scratch.
            dimension_semantics=("parallel", "arbitrary"),
            # With single-buffered constants + deduped activation streams this
            # leaves headroom even on v7x's 64 MiB per-TC VMEM.
            vmem_limit_bytes=48 * 1024 * 1024,
        ),
    )(
        hs_in, pos_in,
        wq, params["bq"], wk, params["bk"], wv, params["bv"], wo, params["bo"],
        params["ln1_g"], params["ln1_b"],
        w1, params["b1"], w2, params["b2"],
        params["ln2_g"], params["ln2_b"],
    )

    if s_pad != S:
        out = out[:, :S, :]
    return out


def detr_encoder(input_embeds, object_queries, layer_params, *,
                 num_heads, max_q_tile=128):
    """DetrEncoder.forward (eval mode, attention_mask=None, last_hidden_state)."""
    hidden_states = input_embeds   # input dropout is a no-op in eval mode
    for params in layer_params:
        hidden_states = detr_encoder_layer(
            hidden_states, object_queries, params,
            num_heads=num_heads, max_q_tile=max_q_tile)
    return hidden_states


# ---------------------------------------------------------------------------
# Pure-JAX reference (same math / same bf16-operand, f32-accumulate policy)
# ---------------------------------------------------------------------------
def _ref_layer(hs, pos, p, num_heads, eps=1e-5):
    f32, bf16 = jnp.float32, jnp.bfloat16
    B, S, D = hs.shape
    hd = D // num_heads
    wq, wk, wv, wo = (p[n].astype(bf16) for n in ("wq", "wk", "wv", "wo"))
    w1, w2 = p["w1"].astype(bf16), p["w2"].astype(bf16)

    x = (hs + pos).astype(bf16)
    q = (jnp.einsum("bsd,de->bse", x, wq, preferred_element_type=f32)
         + p["bq"]) * (hd ** 0.5)
    k = jnp.einsum("bsd,de->bse", x, wk, preferred_element_type=f32) + p["bk"]
    v = jnp.einsum("bsd,de->bse", hs.astype(bf16), wv,
                   preferred_element_type=f32) + p["bv"]

    def sh(t):
        return t.reshape(B, S, num_heads, hd).transpose(0, 2, 1, 3).astype(bf16)

    qh, kh, vh = sh(q), sh(k), sh(v)
    s = jnp.einsum("bhqd,bhkd->bhqk", qh, kh, preferred_element_type=f32)
    pw = jax.nn.softmax(s, axis=-1)
    a = jnp.einsum("bhqk,bhkd->bhqd", pw.astype(bf16), vh,
                   preferred_element_type=f32)
    a = a.transpose(0, 2, 1, 3).reshape(B, S, D)
    a = jnp.einsum("bsd,de->bse", a.astype(bf16), wo,
                   preferred_element_type=f32) + p["bo"]

    h1 = hs + a
    h1 = ((h1 - h1.mean(-1, keepdims=True))
          * lax.rsqrt(h1.var(-1, keepdims=True) + eps)
          * p["ln1_g"] + p["ln1_b"])
    f = jnp.einsum("bsd,df->bsf", h1.astype(bf16), w1,
                   preferred_element_type=f32) + p["b1"]
    f = jnp.maximum(f, 0.0)
    f = jnp.einsum("bsf,fd->bsd", f.astype(bf16), w2,
                   preferred_element_type=f32) + p["b2"]
    h2 = h1 + f
    return ((h2 - h2.mean(-1, keepdims=True))
            * lax.rsqrt(h2.var(-1, keepdims=True) + eps)
            * p["ln2_g"] + p["ln2_b"])


def _ref_encoder(x, pos, layer_params, num_heads):
    for p in layer_params:
        x = _ref_layer(x, pos, p, num_heads)
    return x


# ---------------------------------------------------------------------------
# Parameter construction (deterministic, synthetic)
# ---------------------------------------------------------------------------
def make_layer_params(key, d_model, ffn_dim):
    ks = jax.random.split(key, 8)
    scale = 0.05
    return {
        "wq": scale * jax.random.normal(ks[0], (d_model, d_model), jnp.float32),
        "bq": scale * jax.random.normal(ks[1], (1, d_model), jnp.float32),
        "wk": scale * jax.random.normal(ks[2], (d_model, d_model), jnp.float32),
        "bk": jnp.zeros((1, d_model), jnp.float32),
        "wv": scale * jax.random.normal(ks[3], (d_model, d_model), jnp.float32),
        "bv": jnp.zeros((1, d_model), jnp.float32),
        "wo": scale * jax.random.normal(ks[4], (d_model, d_model), jnp.float32),
        "bo": jnp.zeros((1, d_model), jnp.float32),
        "ln1_g": jnp.ones((1, d_model), jnp.float32),
        "ln1_b": jnp.zeros((1, d_model), jnp.float32),
        "w1": scale * jax.random.normal(ks[5], (d_model, ffn_dim), jnp.float32),
        "b1": scale * jax.random.normal(ks[6], (1, ffn_dim), jnp.float32),
        "w2": scale * jax.random.normal(ks[7], (ffn_dim, d_model), jnp.float32),
        "b2": jnp.zeros((1, d_model), jnp.float32),
        "ln2_g": jnp.ones((1, d_model), jnp.float32),
        "ln2_b": jnp.zeros((1, d_model), jnp.float32),
    }


if __name__ == "__main__":
    # Small config consistent with DetrConfig semantics.
    # seq_len=20 (not a multiple of 8) exercises the pad+key-mask path;
    # max_q_tile=8 forces 3 query tiles so the K/V scratch-reuse path runs.
    batch, seq_len = 2, 20
    d_model, num_heads, ffn_dim, num_layers = 32, 4, 64, 2

    key = jax.random.PRNGKey(0)
    k_in, k_pos, *k_layers = jax.random.split(key, 2 + num_layers)

    input_embeds = jax.random.normal(k_in, (batch, seq_len, d_model), jnp.float32)
    object_queries = jax.random.normal(k_pos, (batch, seq_len, d_model), jnp.float32)
    layer_params = [make_layer_params(k, d_model, ffn_dim) for k in k_layers]

    out = detr_encoder(input_embeds, object_queries, layer_params,
                       num_heads=num_heads, max_q_tile=8)
    out = jax.block_until_ready(out)

    ref = _ref_encoder(input_embeds, object_queries, layer_params, num_heads)
    assert out.shape == (batch, seq_len, d_model)
    max_err = float(jnp.max(jnp.abs(out - ref)))
    assert jnp.allclose(out, ref, atol=3e-2, rtol=3e-2), \
        f"mismatch vs JAX reference (max abs err {max_err})"

    # TODO(synk): attention_mask / output_attentions / output_hidden_states /
    # layerdrop (training-only or optional) paths are not implemented;
    # eval-mode dropout is a no-op.
    print("KERNEL_OK")
</pallas_src>

<mosaic_0001>
module attributes {stable_mosaic.version = 11 : i64} {
  func.func @_encoder_layer_kernel(%arg0: i32, %arg1: i32, %arg2: memref<1x24x32xf32, #tpu.memory_space<vmem>>, %arg3: memref<1x24x32xf32, #tpu.memory_space<vmem>>, %arg4: memref<32x32xbf16, #tpu.memory_space<vmem>>, %arg5: memref<1x32xf32, #tpu.memory_space<vmem>>, %arg6: memref<32x32xbf16, #tpu.memory_space<vmem>>, %arg7: memref<1x32xf32, #tpu.memory_space<vmem>>, %arg8: memref<32x32xbf16, #tpu.memory_space<vmem>>, %arg9: memref<1x32xf32, #tpu.memory_space<vmem>>, %arg10: memref<32x32xbf16, #tpu.memory_space<vmem>>, %arg11: memref<1x32xf32, #tpu.memory_space<vmem>>, %arg12: memref<1x32xf32, #tpu.memory_space<vmem>>, %arg13: memref<1x32xf32, #tpu.memory_space<vmem>>, %arg14: memref<32x64xbf16, #tpu.memory_space<vmem>>, %arg15: memref<1x64xf32, #tpu.memory_space<vmem>>, %arg16: memref<64x32xbf16, #tpu.memory_space<vmem>>, %arg17: memref<1x32xf32, #tpu.memory_space<vmem>>, %arg18: memref<1x32xf32, #tpu.memory_space<vmem>>, %arg19: memref<1x32xf32, #tpu.memory_space<vmem>>, %arg20: memref<1x8x32xf32, #tpu.memory_space<vmem>>, %arg21: memref<4x24x8xbf16, #tpu.memory_space<vmem>>, %arg22: memref<4x24x8xbf16, #tpu.memory_space<vmem>>) attributes {dimension_semantics = [#tpu.dimension_semantics<parallel>, #tpu.dimension_semantics<arbitrary>], iteration_bounds = array<i64: 2, 3>, scalar_prefetch = 0 : i64, scratch_operands = 2 : i64, tpu.core_type = #tpu.core_type<tc>, window_params = [{pipeline_mode = #tpu.pipeline_mode<synchronous>, transform_indices = @transform_0, window_bounds = array<i64: 1, 24, 32>}, {pipeline_mode = #tpu.pipeline_mode<synchronous>, transform_indices = @transform_1, window_bounds = array<i64: 1, 24, 32>}, {pipeline_mode = #tpu.pipeline_mode<synchronous>, transform_indices = @transform_2, window_bounds = array<i64: 32, 32>}, {pipeline_mode = #tpu.pipeline_mode<synchronous>, transform_indices = @transform_3, window_bounds = array<i64: 1, 32>}, {pipeline_mode = #tpu.pipeline_mode<synchronous>, transform_indices = @transform_4, window_bounds = array<i64: 32, 32>}, {pipeline_mode = #tpu.pipeline_mode<synchronous>, transform_indices = @transform_5, window_bounds = array<i64: 1, 32>}, {pipeline_mode = #tpu.pipeline_mode<synchronous>, transform_indices = @transform_6, window_bounds = array<i64: 32, 32>}, {pipeline_mode = #tpu.pipeline_mode<synchronous>, transform_indices = @transform_7, window_bounds = array<i64: 1, 32>}, {pipeline_mode = #tpu.pipeline_mode<synchronous>, transform_indices = @transform_8, window_bounds = array<i64: 32, 32>}, {pipeline_mode = #tpu.pipeline_mode<synchronous>, transform_indices = @transform_9, window_bounds = array<i64: 1, 32>}, {pipeline_mode = #tpu.pipeline_mode<synchronous>, transform_indices = @transform_10, window_bounds = array<i64: 1, 32>}, {pipeline_mode = #tpu.pipeline_mode<synchronous>, transform_indices = @transform_11, window_bounds = array<i64: 1, 32>}, {pipeline_mode = #tpu.pipeline_mode<synchronous>, transform_indices = @transform_12, window_bounds = array<i64: 32, 64>}, {pipeline_mode = #tpu.pipeline_mode<synchronous>, transform_indices = @transform_13, window_bounds = array<i64: 1, 64>}, {pipeline_mode = #tpu.pipeline_mode<synchronous>, transform_indices = @transform_14, window_bounds = array<i64: 64, 32>}, {pipeline_mode = #tpu.pipeline_mode<synchronous>, transform_indices = @transform_15, window_bounds = array<i64: 1, 32>}, {pipeline_mode = #tpu.pipeline_mode<synchronous>, transform_indices = @transform_16, window_bounds = array<i64: 1, 32>}, {pipeline_mode = #tpu.pipeline_mode<synchronous>, transform_indices = @transform_17, window_bounds = array<i64: 1, 32>}, {transform_indices = @transform_18, window_bounds = array<i64: 1, 8, 32>}]} {
    %c0_i32 = arith.constant 0 : i32
    %0 = arith.cmpi eq, %arg1, %c0_i32 : i32
    %1 = arith.extui %0 : i1 to i32
    %c0_i32_0 = arith.constant 0 : i32
    %2 = arith.cmpi ne, %1, %c0_i32_0 : i32
    scf.if %2 {
      %c0_57 = arith.constant 0 : index
      %c0_58 = arith.constant 0 : index
      %c0_59 = arith.constant 0 : index
      %120 = vector.load %arg2[%c0_57, %c0_58, %c0_59] : memref<1x24x32xf32, #tpu.memory_space<vmem>>, vector<1x24x32xf32>
      %121 = vector.shape_cast %120 : vector<1x24x32xf32> to vector<24x32xf32>
      %c0_60 = arith.constant 0 : index
      %c0_61 = arith.constant 0 : index
      %c0_62 = arith.constant 0 : index
      %122 = vector.load %arg3[%c0_60, %c0_61, %c0_62] : memref<1x24x32xf32, #tpu.memory_space<vmem>>, vector<1x24x32xf32>
      %123 = vector.shape_cast %122 : vector<1x24x32xf32> to vector<24x32xf32>
      %124 = arith.addf %121, %123 : vector<24x32xf32>
      %125 = arith.truncf %124 : vector<24x32xf32> to vector<24x32xbf16>
      %126 = arith.truncf %121 : vector<24x32xf32> to vector<24x32xbf16>
      %c0_63 = arith.constant 0 : index
      %c0_64 = arith.constant 0 : index
      %127 = vector.load %arg6[%c0_63, %c0_64] : memref<32x32xbf16, #tpu.memory_space<vmem>>, vector<32x32xbf16>
      %cst_65 = arith.constant dense<0.000000e+00> : vector<24x32xf32>
      %128 = tpu.matmul %125, %127, %cst_65 {dimension_numbers = #tpu.dot_dimension_numbers<[1], [0], [0], [1], [0, 0, 1, 1], [], []>} : vector<24x32xbf16>, vector<32x32xbf16>, vector<24x32xf32> -> vector<24x32xf32>
      %c0_66 = arith.constant 0 : index
      %c0_67 = arith.constant 0 : index
      %129 = vector.load %arg7[%c0_66, %c0_67] : memref<1x32xf32, #tpu.memory_space<vmem>>, vector<1x32xf32>
      %130 = vector.broadcast %129 : vector<1x32xf32> to vector<24x32xf32>
      %131 = arith.addf %128, %130 : vector<24x32xf32>
      %c0_68 = arith.constant 0 : index
      %c0_69 = arith.constant 0 : index
      %132 = vector.load %arg8[%c0_68, %c0_69] : memref<32x32xbf16, #tpu.memory_space<vmem>>, vector<32x32xbf16>
      %cst_70 = arith.constant dense<0.000000e+00> : vector<24x32xf32>
      %133 = tpu.matmul %126, %132, %cst_70 {dimension_numbers = #tpu.dot_dimension_numbers<[1], [0], [0], [1], [0, 0, 1, 1], [], []>} : vector<24x32xbf16>, vector<32x32xbf16>, vector<24x32xf32> -> vector<24x32xf32>
      %c0_71 = arith.constant 0 : index
      %c0_72 = arith.constant 0 : index
      %134 = vector.load %arg9[%c0_71, %c0_72] : memref<1x32xf32, #tpu.memory_space<vmem>>, vector<1x32xf32>
      %135 = vector.broadcast %134 : vector<1x32xf32> to vector<24x32xf32>
      %136 = arith.addf %133, %135 : vector<24x32xf32>
      %137 = arith.truncf %131 : vector<24x32xf32> to vector<24x32xbf16>
      %138 = vector.shape_cast %137 : vector<24x32xbf16> to vector<24x4x8xbf16>
      %139 = tpu.transpose %138, [1, 0, 2] : vector<24x4x8xbf16> -> vector<4x24x8xbf16>
      %c0_73 = arith.constant 0 : index
      %c0_74 = arith.constant 0 : index
      %c0_75 = arith.constant 0 : index
      %140 = vector.load %arg21[%c0_73, %c0_74, %c0_75] : memref<4x24x8xbf16, #tpu.memory_space<vmem>>, vector<4x24x8xbf16>
      tpu.vector_store %arg21[%c0_73, %c0_74, %c0_75], %139 {strides = array<i32>} : memref<4x24x8xbf16, #tpu.memory_space<vmem>>, vector<4x24x8xbf16>,
      %141 = arith.truncf %136 : vector<24x32xf32> to vector<24x32xbf16>
      %142 = vector.shape_cast %141 : vector<24x32xbf16> to vector<24x4x8xbf16>
      %143 = tpu.transpose %142, [1, 0, 2] : vector<24x4x8xbf16> -> vector<4x24x8xbf16>
      %c0_76 = arith.constant 0 : index
      %c0_77 = arith.constant 0 : index
      %c0_78 = arith.constant 0 : index
      %144 = vector.load %arg22[%c0_76, %c0_77, %c0_78] : memref<4x24x8xbf16, #tpu.memory_space<vmem>>, vector<4x24x8xbf16>
      tpu.vector_store %arg22[%c0_76, %c0_77, %c0_78], %143 {strides = array<i32>} : memref<4x24x8xbf16, #tpu.memory_space<vmem>>, vector<4x24x8xbf16>,
    } else {
    }
    %c8_i32 = arith.constant 8 : i32
    %3 = arith.muli %arg1, %c8_i32 : i32
    %4 = tpu.assume_multiple %3, 8 : i32
    %c0 = arith.constant 0 : index
    %5 = arith.index_cast %4 : i32 to index
    %c0_1 = arith.constant 0 : index
    %6 = vector.load %arg2[%c0, %5, %c0_1] : memref<1x24x32xf32, #tpu.memory_space<vmem>>, vector<1x8x32xf32>
    %7 = vector.shape_cast %6 : vector<1x8x32xf32> to vector<8x32xf32>
    %c0_2 = arith.constant 0 : index
    %8 = arith.index_cast %4 : i32 to index
    %c0_3 = arith.constant 0 : index
    %9 = vector.load %arg3[%c0_2, %8, %c0_3] : memref<1x24x32xf32, #tpu.memory_space<vmem>>, vector<1x8x32xf32>
    %10 = vector.shape_cast %9 : vector<1x8x32xf32> to vector<8x32xf32>
    %11 = arith.addf %7, %10 : vector<8x32xf32>
    %12 = arith.truncf %11 : vector<8x32xf32> to vector<8x32xbf16>
    %c0_4 = arith.constant 0 : index
    %c0_5 = arith.constant 0 : index
    %13 = vector.load %arg4[%c0_4, %c0_5] : memref<32x32xbf16, #tpu.memory_space<vmem>>, vector<32x32xbf16>
    %cst = arith.constant dense<0.000000e+00> : vector<8x32xf32>
    %14 = tpu.matmul %12, %13, %cst {dimension_numbers = #tpu.dot_dimension_numbers<[1], [0], [0], [1], [0, 0, 1, 1], [], []>} : vector<8x32xbf16>, vector<32x32xbf16>, vector<8x32xf32> -> vector<8x32xf32>
    %c0_6 = arith.constant 0 : index
    %c0_7 = arith.constant 0 : index
    %15 = vector.load %arg5[%c0_6, %c0_7] : memref<1x32xf32, #tpu.memory_space<vmem>>, vector<1x32xf32>
    %16 = vector.broadcast %15 : vector<1x32xf32> to vector<8x32xf32>
    %17 = arith.addf %14, %16 : vector<8x32xf32>
    %cst_8 = arith.constant 2.82842708 : f32
    %18 = vector.broadcast %cst_8 : f32 to vector<8x32xf32>
    %19 = arith.mulf %17, %18 : vector<8x32xf32>
    %20 = arith.truncf %19 : vector<8x32xf32> to vector<8x32xbf16>
    %21 = vector.shape_cast %20 : vector<8x32xbf16> to vector<8x4x8xbf16>
    %22 = tpu.transpose %21, [1, 0, 2] : vector<8x4x8xbf16> -> vector<4x8x8xbf16>
    %c0_9 = arith.constant 0 : index
    %c0_10 = arith.constant 0 : index
    %c0_11 = arith.constant 0 : index
    %23 = vector.load %arg21[%c0_9, %c0_10, %c0_11] : memref<4x24x8xbf16, #tpu.memory_space<vmem>>, vector<4x24x8xbf16>
    "tpu.trace_start"() <{level = 10 : i32, message = "hqd,hkd->hqk"}> : () -> ()
    %cst_12 = arith.constant dense<0.000000e+00> : vector<4x8x24xf32>
    %24 = tpu.matmul %22, %23, %cst_12 {dimension_numbers = #tpu.dot_dimension_numbers<[2], [2], [1], [1], [0, 0, 0, 1, 1, 1], [0], [0]>} : vector<4x8x8xbf16>, vector<4x24x8xbf16>, vector<4x8x24xf32> -> vector<4x8x24xf32>
    "tpu.trace_stop"() : () -> ()
    %25 = tpu.iota {dimensions = array<i32: 2>} : vector<1x1x24xi32>
    %c20_i32 = arith.constant 20 : i32
    %26 = vector.broadcast %c20_i32 : i32 to vector<1x1x24xi32>
    %27 = arith.cmpi slt, %25, %26 : vector<1x1x24xi32>
    %cst_13 = arith.constant -1.000000e+30 : f32
    %28 = vector.shape_cast %27 : vector<1x1x24xi1> to vector<1x1x24xi1>
    %29 = vector.broadcast %28 : vector<1x1x24xi1> to vector<4x8x24xi1>
    %30 = vector.broadcast %cst_13 : f32 to vector<4x8x24xf32>
    %31 = arith.select %29, %24, %30 : vector<4x8x24xi1>, vector<4x8x24xf32>
    %cst_14 = arith.constant dense<0xFF800000> : vector<4x8xf32>
    %32 = vector.multi_reduction <maximumf>, %31, %cst_14 [2] : vector<4x8x24xf32> to vector<4x8xf32>
    %33 = vector.shape_cast %32 : vector<4x8xf32> to vector<4x8x1xf32>
    %34 = vector.broadcast %33 : vector<4x8x1xf32> to vector<4x8x24xf32>
    %35 = arith.subf %31, %34 : vector<4x8x24xf32>
    %36 = math.exp %35 : vector<4x8x24xf32>
    %cst_15 = arith.constant dense<0.000000e+00> : vector<4x8xf32>
    %37 = vector.multi_reduction <add>, %36, %cst_15 [2] : vector<4x8x24xf32> to vector<4x8xf32>
    %38 = vector.shape_cast %37 : vector<4x8xf32> to vector<4x8x1xf32>
    %39 = arith.truncf %36 : vector<4x8x24xf32> to vector<4x8x24xbf16>
    %c0_16 = arith.constant 0 : index
    %c0_17 = arith.constant 0 : index
    %c0_18 = arith.constant 0 : index
    %40 = vector.load %arg22[%c0_16, %c0_17, %c0_18] : memref<4x24x8xbf16, #tpu.memory_space<vmem>>, vector<4x24x8xbf16>
    "tpu.trace_start"() <{level = 10 : i32, message = "hqk,hkd->hqd"}> : () -> ()
    %cst_19 = arith.constant dense<0.000000e+00> : vector<4x8x8xf32>
    %41 = tpu.matmul %39, %40, %cst_19 {dimension_numbers = #tpu.dot_dimension_numbers<[2], [1], [1], [2], [0, 0, 0, 1, 1, 2], [0], [0]>} : vector<4x8x24xbf16>, vector<4x24x8xbf16>, vector<4x8x8xf32> -> vector<4x8x8xf32>
    "tpu.trace_stop"() : () -> ()
    %42 = tpu.reciprocal %38 {approx = true} : vector<4x8x1xf32> -> vector<4x8x1xf32>
    %43 = vector.broadcast %42 : vector<4x8x1xf32> to vector<4x8x8xf32>
    %44 = arith.mulf %41, %43 : vector<4x8x8xf32>
    %45 = tpu.transpose %44, [1, 0, 2] : vector<4x8x8xf32> -> vector<8x4x8xf32>
    %46 = vector.shape_cast %45 : vector<8x4x8xf32> to vector<8x32xf32>
    %47 = arith.truncf %46 : vector<8x32xf32> to vector<8x32xbf16>
    %c0_20 = arith.constant 0 : index
    %c0_21 = arith.constant 0 : index
    %48 = vector.load %arg10[%c0_20, %c0_21] : memref<32x32xbf16, #tpu.memory_space<vmem>>, vector<32x32xbf16>
    %cst_22 = arith.constant dense<0.000000e+00> : vector<8x32xf32>
    %49 = tpu.matmul %47, %48, %cst_22 {dimension_numbers = #tpu.dot_dimension_numbers<[1], [0], [0], [1], [0, 0, 1, 1], [], []>} : vector<8x32xbf16>, vector<32x32xbf16>, vector<8x32xf32> -> vector<8x32xf32>
    %c0_23 = arith.constant 0 : index
    %c0_24 = arith.constant 0 : index
    %50 = vector.load %arg11[%c0_23, %c0_24] : memref<1x32xf32, #tpu.memory_space<vmem>>, vector<1x32xf32>
    %51 = vector.broadcast %50 : vector<1x32xf32> to vector<8x32xf32>
    %52 = arith.addf %49, %51 : vector<8x32xf32>
    %53 = arith.addf %7, %52 : vector<8x32xf32>
    %cst_25 = arith.constant dense<0.000000e+00> : vector<8xf32>
    %54 = vector.multi_reduction <add>, %53, %cst_25 [1] : vector<8x32xf32> to vector<8xf32>
    %55 = vector.shape_cast %54 : vector<8xf32> to vector<8x1xf32>
    %cst_26 = arith.constant 3.200000e+01 : f32
    %56 = vector.broadcast %cst_26 : f32 to vector<8x1xf32>
    %57 = arith.divf %55, %56 : vector<8x1xf32>
    %58 = vector.broadcast %57 : vector<8x1xf32> to vector<8x32xf32>
    %59 = arith.subf %53, %58 : vector<8x32xf32>
    %60 = arith.mulf %59, %59 : vector<8x32xf32>
    %cst_27 = arith.constant dense<0.000000e+00> : vector<8xf32>
    %61 = vector.multi_reduction <add>, %60, %cst_27 [1] : vector<8x32xf32> to vector<8xf32>
    %62 = vector.shape_cast %61 : vector<8xf32> to vector<8x1xf32>
    %cst_28 = arith.constant 3.200000e+01 : f32
    %63 = vector.broadcast %cst_28 : f32 to vector<8x1xf32>
    %64 = arith.divf %62, %63 : vector<8x1xf32>
    %65 = vector.broadcast %57 : vector<8x1xf32> to vector<8x32xf32>
    %66 = arith.subf %53, %65 : vector<8x32xf32>
    %cst_29 = arith.constant 9.99999974E-6 : f32
    %67 = vector.broadcast %cst_29 : f32 to vector<8x1xf32>
    %68 = arith.addf %64, %67 : vector<8x1xf32>
    %69 = math.rsqrt %68 : vector<8x1xf32>
    %70 = vector.broadcast %69 : vector<8x1xf32> to vector<8x32xf32>
    %71 = arith.mulf %66, %70 : vector<8x32xf32>
    %c0_30 = arith.constant 0 : index
    %c0_31 = arith.constant 0 : index
    %72 = vector.load %arg12[%c0_30, %c0_31] : memref<1x32xf32, #tpu.memory_space<vmem>>, vector<1x32xf32>
    %73 = vector.broadcast %72 : vector<1x32xf32> to vector<8x32xf32>
    %74 = arith.mulf %71, %73 : vector<8x32xf32>
    %c0_32 = arith.constant 0 : index
    %c0_33 = arith.constant 0 : index
    %75 = vector.load %arg13[%c0_32, %c0_33] : memref<1x32xf32, #tpu.memory_space<vmem>>, vector<1x32xf32>
    %76 = vector.broadcast %75 : vector<1x32xf32> to vector<8x32xf32>
    %77 = arith.addf %74, %76 : vector<8x32xf32>
    %78 = arith.truncf %77 : vector<8x32xf32> to vector<8x32xbf16>
    %c0_34 = arith.constant 0 : index
    %c0_35 = arith.constant 0 : index
    %79 = vector.load %arg14[%c0_34, %c0_35] : memref<32x64xbf16, #tpu.memory_space<vmem>>, vector<32x64xbf16>
    %cst_36 = arith.constant dense<0.000000e+00> : vector<8x64xf32>
    %80 = tpu.matmul %78, %79, %cst_36 {dimension_numbers = #tpu.dot_dimension_numbers<[1], [0], [0], [1], [0, 0, 1, 1], [], []>} : vector<8x32xbf16>, vector<32x64xbf16>, vector<8x64xf32> -> vector<8x64xf32>
    %c0_37 = arith.constant 0 : index
    %c0_38 = arith.constant 0 : index
    %81 = vector.load %arg15[%c0_37, %c0_38] : memref<1x64xf32, #tpu.memory_space<vmem>>, vector<1x64xf32>
    %82 = vector.broadcast %81 : vector<1x64xf32> to vector<8x64xf32>
    %83 = arith.addf %80, %82 : vector<8x64xf32>
    %cst_39 = arith.constant 0.000000e+00 : f32
    %84 = vector.broadcast %cst_39 : f32 to vector<8x64xf32>
    %85 = arith.maximumf %83, %84 : vector<8x64xf32>
    %86 = arith.truncf %85 : vector<8x64xf32> to vector<8x64xbf16>
    %c0_40 = arith.constant 0 : index
    %c0_41 = arith.constant 0 : index
    %87 = vector.load %arg16[%c0_40, %c0_41] : memref<64x32xbf16, #tpu.memory_space<vmem>>, vector<64x32xbf16>
    %cst_42 = arith.constant dense<0.000000e+00> : vector<8x32xf32>
    %88 = tpu.matmul %86, %87, %cst_42 {dimension_numbers = #tpu.dot_dimension_numbers<[1], [0], [0], [1], [0, 0, 1, 1], [], []>} : vector<8x64xbf16>, vector<64x32xbf16>, vector<8x32xf32> -> vector<8x32xf32>
    %c0_43 = arith.constant 0 : index
    %c0_44 = arith.constant 0 : index
    %89 = vector.load %arg17[%c0_43, %c0_44] : memref<1x32xf32, #tpu.memory_space<vmem>>, vector<1x32xf32>
    %90 = vector.broadcast %89 : vector<1x32xf32> to vector<8x32xf32>
    %91 = arith.addf %88, %90 : vector<8x32xf32>
    %92 = arith.addf %77, %91 : vector<8x32xf32>
    %cst_45 = arith.constant dense<0.000000e+00> : vector<8xf32>
    %93 = vector.multi_reduction <add>, %92, %cst_45 [1] : vector<8x32xf32> to vector<8xf32>
    %94 = vector.shape_cast %93 : vector<8xf32> to vector<8x1xf32>
    %cst_46 = arith.constant 3.200000e+01 : f32
    %95 = vector.broadcast %cst_46 : f32 to vector<8x1xf32>
    %96 = arith.divf %94, %95 : vector<8x1xf32>
    %97 = vector.broadcast %96 : vector<8x1xf32> to vector<8x32xf32>
    %98 = arith.subf %92, %97 : vector<8x32xf32>
    %99 = arith.mulf %98, %98 : vector<8x32xf32>
    %cst_47 = arith.constant dense<0.000000e+00> : vector<8xf32>
    %100 = vector.multi_reduction <add>, %99, %cst_47 [1] : vector<8x32xf32> to vector<8xf32>
    %101 = vector.shape_cast %100 : vector<8xf32> to vector<8x1xf32>
    %cst_48 = arith.constant 3.200000e+01 : f32
    %102 = vector.broadcast %cst_48 : f32 to vector<8x1xf32>
    %103 = arith.divf %101, %102 : vector<8x1xf32>
    %104 = vector.broadcast %96 : vector<8x1xf32> to vector<8x32xf32>
    %105 = arith.subf %92, %104 : vector<8x32xf32>
    %cst_49 = arith.constant 9.99999974E-6 : f32
    %106 = vector.broadcast %cst_49 : f32 to vector<8x1xf32>
    %107 = arith.addf %103, %106 : vector<8x1xf32>
    %108 = math.rsqrt %107 : vector<8x1xf32>
    %109 = vector.broadcast %108 : vector<8x1xf32> to vector<8x32xf32>
    %110 = arith.mulf %105, %109 : vector<8x32xf32>
    %c0_50 = arith.constant 0 : index
    %c0_51 = arith.constant 0 : index
    %111 = vector.load %arg18[%c0_50, %c0_51] : memref<1x32xf32, #tpu.memory_space<vmem>>, vector<1x32xf32>
    %112 = vector.broadcast %111 : vector<1x32xf32> to vector<8x32xf32>
    %113 = arith.mulf %110, %112 : vector<8x32xf32>
    %c0_52 = arith.constant 0 : index
    %c0_53 = arith.constant 0 : index
    %114 = vector.load %arg19[%c0_52, %c0_53] : memref<1x32xf32, #tpu.memory_space<vmem>>, vector<1x32xf32>
    %115 = vector.broadcast %114 : vector<1x32xf32> to vector<8x32xf32>
    %116 = arith.addf %113, %115 : vector<8x32xf32>
    %c0_54 = arith.constant 0 : index
    %c0_55 = arith.constant 0 : index
    %c0_56 = arith.constant 0 : index
    %117 = vector.load %arg20[%c0_54, %c0_55, %c0_56] : memref<1x8x32xf32, #tpu.memory_space<vmem>>, vector<1x8x32xf32>
    %118 = vector.shape_cast %117 : vector<1x8x32xf32> to vector<8x32xf32>
    %119 = vector.shape_cast %116 : vector<8x32xf32> to vector<1x8x32xf32>
    tpu.vector_store %arg20[%c0_54, %c0_55, %c0_56], %119 {strides = array<i32>} : memref<1x8x32xf32, #tpu.memory_space<vmem>>, vector<1x8x32xf32>,
    return
  }
  func.func @transform_0(%arg0: i32, %arg1: i32) -> (i32, i32, i32) {
    %c0_i32 = arith.constant 0 : i32
    %c0_i32_0 = arith.constant 0 : i32
    %c0_i32_1 = arith.constant 0 : i32
    return %arg0, %c0_i32, %c0_i32_0 : i32, i32, i32
  }
  func.func @transform_1(%arg0: i32, %arg1: i32) -> (i32, i32, i32) {
    %c0_i32 = arith.constant 0 : i32
    %c0_i32_0 = arith.constant 0 : i32
    %c0_i32_1 = arith.constant 0 : i32
    return %arg0, %c0_i32, %c0_i32_0 : i32, i32, i32
  }
  func.func @transform_2(%arg0: i32, %arg1: i32) -> (i32, i32) {
    %c0_i32 = arith.constant 0 : i32
    %c0_i32_0 = arith.constant 0 : i32
    %c0_i32_1 = arith.constant 0 : i32
    return %c0_i32, %c0_i32_0 : i32, i32
  }
  func.func @transform_3(%arg0: i32, %arg1: i32) -> (i32, i32) {
    %c0_i32 = arith.constant 0 : i32
    %c0_i32_0 = arith.constant 0 : i32
    %c0_i32_1 = arith.constant 0 : i32
    return %c0_i32, %c0_i32_0 : i32, i32
  }
  func.func @transform_4(%arg0: i32, %arg1: i32) -> (i32, i32) {
    %c0_i32 = arith.constant 0 : i32
    %c0_i32_0 = arith.constant 0 : i32
    %c0_i32_1 = arith.constant 0 : i32
    return %c0_i32, %c0_i32_0 : i32, i32
  }
  func.func @transform_5(%arg0: i32, %arg1: i32) -> (i32, i32) {
    %c0_i32 = arith.constant 0 : i32
    %c0_i32_0 = arith.constant 0 : i32
    %c0_i32_1 = arith.constant 0 : i32
    return %c0_i32, %c0_i32_0 : i32, i32
  }
  func.func @transform_6(%arg0: i32, %arg1: i32) -> (i32, i32) {
    %c0_i32 = arith.constant 0 : i32
    %c0_i32_0 = arith.constant 0 : i32
    %c0_i32_1 = arith.constant 0 : i32
    return %c0_i32, %c0_i32_0 : i32, i32
  }
  func.func @transform_7(%arg0: i32, %arg1: i32) -> (i32, i32) {
    %c0_i32 = arith.constant 0 : i32
    %c0_i32_0 = arith.constant 0 : i32
    %c0_i32_1 = arith.constant 0 : i32
    return %c0_i32, %c0_i32_0 : i32, i32
  }
  func.func @transform_8(%arg0: i32, %arg1: i32) -> (i32, i32) {
    %c0_i32 = arith.constant 0 : i32
    %c0_i32_0 = arith.constant 0 : i32
    %c0_i32_1 = arith.constant 0 : i32
    return %c0_i32, %c0_i32_0 : i32, i32
  }
  func.func @transform_9(%arg0: i32, %arg1: i32) -> (i32, i32) {
    %c0_i32 = arith.constant 0 : i32
    %c0_i32_0 = arith.constant 0 : i32
    %c0_i32_1 = arith.constant 0 : i32
    return %c0_i32, %c0_i32_0 : i32, i32
  }
  func.func @transform_10(%arg0: i32, %arg1: i32) -> (i32, i32) {
    %c0_i32 = arith.constant 0 : i32
    %c0_i32_0 = arith.constant 0 : i32
    %c0_i32_1 = arith.constant 0 : i32
    return %c0_i32, %c0_i32_0 : i32, i32
  }
  func.func @transform_11(%arg0: i32, %arg1: i32) -> (i32, i32) {
    %c0_i32 = arith.constant 0 : i32
    %c0_i32_0 = arith.constant 0 : i32
    %c0_i32_1 = arith.constant 0 : i32
    return %c0_i32, %c0_i32_0 : i32, i32
  }
  func.func @transform_12(%arg0: i32, %arg1: i32) -> (i32, i32) {
    %c0_i32 = arith.constant 0 : i32
    %c0_i32_0 = arith.constant 0 : i32
    %c0_i32_1 = arith.constant 0 : i32
    return %c0_i32, %c0_i32_0 : i32, i32
  }
  func.func @transform_13(%arg0: i32, %arg1: i32) -> (i32, i32) {
    %c0_i32 = arith.constant 0 : i32
    %c0_i32_0 = arith.constant 0 : i32
    %c0_i32_1 = arith.constant 0 : i32
    return %c0_i32, %c0_i32_0 : i32, i32
  }
  func.func @transform_14(%arg0: i32, %arg1: i32) -> (i32, i32) {
    %c0_i32 = arith.constant 0 : i32
    %c0_i32_0 = arith.constant 0 : i32
    %c0_i32_1 = arith.constant 0 : i32
    return %c0_i32, %c0_i32_0 : i32, i32
  }
  func.func @transform_15(%arg0: i32, %arg1: i32) -> (i32, i32) {
    %c0_i32 = arith.constant 0 : i32
    %c0_i32_0 = arith.constant 0 : i32
    %c0_i32_1 = arith.constant 0 : i32
    return %c0_i32, %c0_i32_0 : i32, i32
  }
  func.func @transform_16(%arg0: i32, %arg1: i32) -> (i32, i32) {
    %c0_i32 = arith.constant 0 : i32
    %c0_i32_0 = arith.constant 0 : i32
    %c0_i32_1 = arith.constant 0 : i32
    return %c0_i32, %c0_i32_0 : i32, i32
  }
  func.func @transform_17(%arg0: i32, %arg1: i32) -> (i32, i32) {
    %c0_i32 = arith.constant 0 : i32
    %c0_i32_0 = arith.constant 0 : i32
    %c0_i32_1 = arith.constant 0 : i32
    return %c0_i32, %c0_i32_0 : i32, i32
  }
  func.func @transform_18(%arg0: i32, %arg1: i32) -> (i32, i32, i32) {
    %c0_i32 = arith.constant 0 : i32
    %c0_i32_0 = arith.constant 0 : i32
    return %arg0, %arg1, %c0_i32 : i32, i32, i32
  }
}

</mosaic_0001>

<bundles_post_ra>
// kernel: tpu_custom_call.1
= control target key start
LH: loop header
LB: loop body
LE: loop exit
PB: predicated region body
PF: predicated region fallthrough
CT: control target
= control target key end

     0   :  { %s5201_s0 = inlined_call_operand.vmem [shape: f32[2,24,32], index: 0, kind: input, shape index: {}]   ;;  %s5202_s1 = inlined_call_operand.hbm [shape: f32[2,24,32], index: 1, kind: input, shape index: {}]   ;;  %s5203_s2 = inlined_call_operand.hbm [shape: bf16[32,32], index: 2, kind: input, shape index: {}]   ;;  %s5204_s3 = inlined_call_operand.hbm [shape: f32[1,32], index: 3, kind: input, shape index: {}]   ;;  %s5205_s4 = inlined_call_operand.hbm [shape: bf16[32,32], index: 4, kind: input, shape index: {}]   ;;  %s5206_s5 = inlined_call_operand.hbm [shape: f32[1,32], index: 5, kind: input, shape index: {}]   ;;  %s5207_s6 = inlined_call_operand.hbm [shape: bf16[32,32], index: 6, kind: input, shape index: {}]   ;;  %s5208_s7 = inlined_call_operand.hbm [shape: f32[1,32], index: 7, kind: input, shape index: {}]   ;;  %s5209_s8 = inlined_call_operand.hbm [shape: bf16[32,32], index: 8, kind: input, shape index: {}]   ;;  %s5210_s9 = inlined_call_operand.hbm [shape: f32[1,32], index: 9, kind: input, shape index: {}]   ;;  %s5211_s10 = inlined_call_operand.vmem [shape: f32[1,32], index: 10, kind: input, shape index: {}]   ;;  %s5212_s11 = inlined_call_operand.vmem [shape: f32[1,32], index: 11, kind: input, shape index: {}]   ;;  %s5213_s12 = inlined_call_operand.vmem [shape: bf16[32,64], index: 12, kind: input, shape index: {}]   ;;  %s5214_s13 = inlined_call_operand.vmem [shape: f32[1,64], index: 13, kind: input, shape index: {}]   ;;  %s5215_s14 = inlined_call_operand.vmem [shape: bf16[64,32], index: 14, kind: input, shape index: {}]   ;;  %s5216_s15 = inlined_call_operand.vmem [shape: f32[1,32], index: 15, kind: input, shape index: {}]   ;;  %s5217_s16 = inlined_call_operand.vmem [shape: f32[1,32], index: 16, kind: input, shape index: {}]   ;;  %s5218_s17 = inlined_call_operand.vmem [shape: f32[1,32], index: 17, kind: input, shape index: {}]   ;;  %s5219_s18 = inlined_call_operand.hbm [shape: f32[2,24,32], index: 18, kind: output, shape index: {}]  }
   0x1   :  { %5241 = sst [smem:[#allocation36_spill]] %s5201_s0 }
   0x2   :  { %5242 = sst [smem:[#allocation37_spill]] %s5202_s1 }
   0x3   :  { %5243 = sst [smem:[#allocation38_spill]] %s5203_s2 }
   0x4   :  { %5244 = sst [smem:[#allocation39_spill]] %s5205_s4 }
   0x5   :  { %5245 = sst [smem:[#allocation40_spill]] %s5207_s6 }
   0x6   :  { %5246 = sst [smem:[#allocation41_spill]] %s5211_s10 }
   0x7   :  { %5247 = sst [smem:[#allocation42_spill]] %s5212_s11 }
   0x8   :  { %5248 = sst [smem:[#allocation43_spill]] %s5214_s13 }
   0x9   :  { %5249 = sst [smem:[#allocation44_spill]] %s5216_s15 }
   0xa   :  { %5250 = sst [smem:[#allocation45_spill]] %s5217_s16 }
   0xb   :  { %5251 = sst [smem:[#allocation46_spill]] %s5218_s17 }
   0xc   :  { %5252 = sst [smem:[#allocation47_spill]] %s5219_s18 }
   0xd   :  { %23 = vsyncpa [#allocation5], 0 }
   0xe   :  { %24 = vsyncpa [#allocation8], 0 }
   0xf   :  { %25 = vsyncpa [#allocation11], 0 }
  0x10   :  { %26 = vsyncpa [#allocation14], 0 }
  0x11   :  { %27 = vsyncpa [#allocation17], 0 }
  0x12   :  { %28 = vsyncpa [#allocation6], 0 }
  0x13   :  { %30 = vsyncpa [#allocation6 + $0x1], 0  ;;  %s4388_s27 = smov 0   ;;  %s4390_s28 = smov 0  }
  0x14   :  { %s4392_s29 = smov 0   ;;  %s4394_s30 = smov 0  }
  0x15   :  { %s4396_s0 = smov 0   ;;  %s4398_s19 = smov 0  }
  0x16   :  { %s4400_s1 = smov 0   ;;  %s4402_s20 = smov 0  }
  0x17   :  { %s4404_s21 = smov 0   ;;  %s4406_s22 = smov 0  }
  0x18   :  { %s4408_s2 = smov 0  }
  0x19 LB: > { %5253 = sst [smem:[#allocation26_spill]] %s4220_s27  ;;  %s3359_s23 = sadd.s32 4294967295, %s4260_s2   ;;  %s4260_s2 = sphi %s4408_s2, %s36_s2   ;;  %s4256_s22 = sphi %s4406_s22, %s5302_s22   ;;  %s4252_s21 = sphi %s4404_s21, %s5301_s21   ;;  %s4248_s20 = sphi %s4402_s20, %s5307_s20   ;;  %s4244_s1 = sphi %s4400_s1, %s5299_s1   ;;  %s4240_s19 = sphi %s4398_s19, %s5298_s19   ;;  %s4236_s0 = sphi %s4396_s0, %s5306_s0   ;;  %s4232_s30 = sphi %s4394_s30, %s5305_s30   ;;  %s4228_s29 = sphi %s4392_s29, %s5296_s29   ;;  %s4224_s28 = sphi %s4390_s28, %s5304_s28   ;;  %s4220_s27 = sphi %s4388_s27, %s5303_s27  }
  0x1a   : > { %5254 = sst [smem:[#allocation27_spill]] %s4228_s29  ;;  %s3360_s24 = sadd.s32 4294967294, %s4260_s2  }
  0x1b   : > { %5255 = sst [smem:[#allocation28_spill]] %s4240_s19  ;;  %s45_s25 = sadd.s32 1, %s4252_s21 }
  0x1c   : > { %5256 = sst [smem:[#allocation29_spill]] %s4252_s21  ;;  %s48_s26 = sadd.s32 1, %s4256_s22 }
  0x1d   : > { %5257 = sst [smem:[#allocation30_spill]] %s4256_s22  ;;  %p46_p0 = scmp.ge.s32.totalorder %s45_s25, 3 }
  0x1e   : > { %s81_s18 = sadd.s32 1, %s4240_s19  ;;  %p4448_p1 = scmp.eq.s32.totalorder %s3359_s23, 0 }
  0x1f   : > { %s445_s16 = sadd.s32 1, %s4228_s29  ;;  %s5309_s25 = smov (%p46_p0, %s45_s25), 0 }
  0x20   : > { %s5258_s17 = scalar_select %p4448_p1, 1, 0 }
  0x21   : > { %5259 = sst [smem:[#allocation31_spill]] %s5309_s25  ;;  %s5311_s26 = smov (!%p46_p0, %s48_s26), %s4256_s22 }
  0x22   : > { %s441_s15 = ssub.s32 %s4252_s21, %s5309_s25  ;;  %p455_p2 = scmp.ne.s32.totalorder %s4228_s29, %s4224_s28 }
  0x23   : > { %p50_p3 = scmp.ge.s32.totalorder %s5311_s26, 2  ;;  %p456_p4 = scmp.eq.s32.totalorder %s3359_s23, 5 }
  0x24   : > { %p461_p5 = scmp.ne.s32.totalorder %s4224_s28, %s4220_s27  ;;  %p462_p6 = scmp.eq.s32.totalorder %s3360_s24, 5 }
  0x25   : > { %s5313_s26 = smov (%p50_p3, %s5311_s26), 0  ;;  %p4464_p7 = por %p456_p4, %p455_p2 }
  0x26   : > { %5260 = sst [smem:[#allocation32_spill]] %s5313_s26  ;;  %p4468_p8 = por %p462_p6, %p461_p5 }
  0x27   : > { %s5261_s13 = scalar_select %p4464_p7, 1, 0 }
  0x28   : > { %s5262_s11 = scalar_select %p4468_p8, 1, 0 }
  0x29   : > { %s78_s10 = ssub.s32 %s4256_s22, %s5313_s26  ;;  %p3361_p9 = scmp.ge.s32.totalorder %s4260_s2, 1 }
  0x2a   : > { %5263 = sst [smem:[#allocation33_spill]] %s5262_s11  ;;  %p79_p10 = scmp.eq.s32.totalorder %s78_s10, 0 }
  0x2b   : > { %s442_s25 = sor.u32 %s441_s15, %s78_s10  ;;  %p469_p12 = scmp.lt.s32.totalorder %s4260_s2, 7 }
  0x2c   : > { %p443_p11 = scmp.eq.s32.totalorder %s442_s25, 0  ;;  %s4262_s27 = smov [#allocation7]  }
  0x2d   : > { %s4477_s23 = scalar_select %p79_p10, %s4240_s19, %s81_s18  }
  0x2e   : > { %s4480_s24 = scalar_select %p443_p11, %s4228_s29, %s445_s16  }
  0x2f   : > { %5264 = sst [smem:[#allocation34_spill]] %s4477_s23  ;;  %p4482_p13 = pnand %p3361_p9, %p469_p12 }
  0x30   : > { %5265 = sst [smem:[#allocation35_spill]] %s4480_s24  ;;  %s505_s11 = sshll.u32 %s4262_s27, 4  ;;  %s506_s11 = int_to_ptr.vmem [resolvable:$true] %s505_s11 }
  0x31   : > { %s5266_s21 = scalar_select %p4482_p13, 1, 0 }
  0x32   : > { %p5229_p0 = pneg %p4482_p13  ;;  %s4263_s15 = smov [#allocation10]  }
  0x33   : > { %s529_s16 = sshll.u32 %s4263_s15, 4  ;;  %s3899_s25 = scalar_lea.vmem %s506_s11, 256  ;;  %s530_s16 = int_to_ptr.vmem [resolvable:$true] %s529_s16 }
  0x34   : > { %p4493_p2 = pnand %p5229_p0, %p4448_p1  ;;  %p3900_p4 = scmp.ne.s32.totalorder %s506_s11, %s3899_s25 }
  0x35   : > { %p3907_p9 = scmp.lt.s32.totalorder %s506_s11, %s506_s11  ;;  %p3908_p10 = scmp.lt.s32.totalorder %s3899_s25, %s3899_s25 }
  0x36   : > { %s5267_s10 = scalar_select %p4493_p2, 1, 0 }
  0x37   : > { %p4499_p3 = pneg %p4493_p2  ;;  %p3909_p11 = por %p3908_p10, %p3907_p9 }
  0x39   : > { %s5268_s18 = scalar_select %p4499_p3, 1, 0 }
  0x3a   : > { %p3902_p5 = pnand %p3900_p4, %p4499_p3 }
  0x3c   : > { %p3903_p6 = pneg %p3902_p5 }
  0x3e   : > { %p3910_p12 = pnand %p3909_p11, %p3903_p6 }
  0x40   : > { %3913 = shalt.err (!%p3910_p12)
}
  0x41   : > { %s4264_s27 = smov 64   ;;  %s4265_s15 = smov 4  }
  0x42   : > { %s5269_s23 = sld [smem:[#allocation38_spill]]  ;;  %s3925_s19 = scalar_lea.vmem %s530_s16, 256 }
  0x43   : > { %p3926_p4 = scmp.ne.s32.totalorder %s530_s16, %s3925_s19  ;;  %p3933_p9 = scmp.lt.s32.totalorder %s530_s16, %s530_s16 }
  0x44   : > { %p3934_p6 = scmp.lt.s32.totalorder %s3925_s19, %s3925_s19 }
  0x45   : > { %p3928_p5 = pnand %p3926_p4, %p4499_p3 }
  0x46   : > { %p3935_p10 = por %p3934_p6, %p3933_p9 }
  0x47   : > { %p3929_p0 = pneg %p3928_p5 }
  0x48   : > { %3677 = dma.hbm_to_vmem [thread:$0]  (!%p4493_p2), %s5269_s23, 256, %s506_s11, [#allocation8], %s4264_s27, %s4264_s27, %s4265_s15  }
  0x49   : > { %p3936_p11 = pnand %p3935_p10, %p3929_p0 }
  0x4b   : > { %3939 = shalt.err (!%p3936_p11)
}
  0x4c   : > { %s5270_s4 = sld [smem:[#allocation39_spill]]  ;;  %s4266_s11 = smov [#allocation13]  }
  0x4d   : > { %s553_s22 = sshll.u32 %s4266_s11, 4  ;;  %s4267_s26 = smov [#allocation16]   ;;  %s554_s22 = int_to_ptr.vmem [resolvable:$true] %s553_s22 }
  0x4e   : > { %s577_s23 = sshll.u32 %s4267_s26, 4  ;;  %s3951_s29 = scalar_lea.vmem %s554_s22, 256  ;;  %s578_s23 = int_to_ptr.vmem [resolvable:$true] %s577_s23 }
  0x4f   : > { %p3952_p12 = scmp.ne.s32.totalorder %s554_s22, %s3951_s29  ;;  %p3959_p5 = scmp.lt.s32.totalorder %s554_s22, %s554_s22 }
  0x50   : > { %p3960_p9 = scmp.lt.s32.totalorder %s3951_s29, %s3951_s29 }
  0x51   : > { %p3954_p0 = pnand %p3952_p12, %p4499_p3 }
  0x52   : > { %3683 = dma.hbm_to_vmem [thread:$0]  (!%p4493_p2), %s5270_s4, 256, %s530_s16, [#allocation11], %s4264_s27, %s4264_s27, %s4265_s15  }
  0x53   : > { %p3955_p4 = pneg %p3954_p0  ;;  %p3961_p6 = por %p3960_p9, %p3959_p5 }
  0x55   : > { %p3962_p10 = pnand %p3961_p6, %p3955_p4 }
  0x57   : > { %3965 = shalt.err (!%p3962_p10)
}
  0x58   : > { %s5271_s6 = sld [smem:[#allocation40_spill]]  ;;  %s3977_s16 = scalar_lea.vmem %s578_s23, 256 }
  0x59   : > { %p3978_p11 = scmp.ne.s32.totalorder %s578_s23, %s3977_s16  ;;  %p3985_p8 = scmp.lt.s32.totalorder %s578_s23, %s578_s23 }
  0x5a   : > { %p3986_p5 = scmp.lt.s32.totalorder %s3977_s16, %s3977_s16 }
  0x5b   : > { %p3980_p12 = pnand %p3978_p11, %p4499_p3 }
  0x5c   : > { %p3987_p4 = por %p3986_p5, %p3985_p8 }
  0x5d   : > { %p3981_p0 = pneg %p3980_p12 }
  0x5e   : > { %3689 = dma.hbm_to_vmem [thread:$0]  (!%p4493_p2), %s5271_s6, 256, %s554_s22, [#allocation14], %s4264_s27, %s4264_s27, %s4265_s15  }
  0x5f   : > { %p3988_p9 = pnand %p3987_p4, %p3981_p0 }
  0x61   : > { %3991 = shalt.err (!%p3988_p9)
}
  0x62   : > { %3695 = dma.hbm_to_vmem [thread:$0]  (!%p4493_p2), %s5209_s8, 256, %s578_s23, [#allocation17], %s4264_s27, %s4264_s27, %s4265_s15  }
  0x63   : > { %s3632_s11 = smul.u32 384, %s4248_s20  ;;  %p94_p6 = scmp.ne.s32.totalorder %s4236_s0, %s4232_s30 }
  0x64   : > { %s5272_s19 = sld [smem:[#allocation37_spill]]  ;;  %s4268_s4 = smov [#allocation4]  }
  0x65   : > { %s492_s6 = sshll.u32 %s4268_s4, 4  ;;  %p4553_p8 = por %p4448_p1, %p94_p6  ;;  %s4557_s6 = int_to_ptr.vmem [resolvable:$true] %s492_s6 }
  0x66   : > { %p5275_p10 = pneg %p4482_p13  ;;  %s4269_s27 = smov [#allocation9]  }
  0x67   : > { %s5274_s29 = scalar_select %p4553_p8, 1, 0 }
  0x68   : > { %p4564_p11 = pnand %p5275_p10, %p4553_p8  ;;  %s519_s15 = sshll.u32 %s4269_s27, 4  ;;  %s4568_s15 = int_to_ptr.vmem [resolvable:$true] %s519_s15 }
  0x6a   : > { %s5273_s24 = smov %s5272_s19  ;;  %s4549_s16 = scalar_lea.hbm %s5272_s19, %s3632_s11 }
  0x6b   : > { %s3992_s4 = scalar_lea.hbm %s4549_s16, 384  ;;  %p3994_p0 = pneg %p4564_p11 }
  0x6c   : > { %p3993_p12 = scmp.ne.s32.totalorder %s4549_s16, %s3992_s4  ;;  %s3997_s11 = scalar_lea.hbm %s5273_s24, 768 }
  0x6d   : > { %p3998_p9 = scmp.lt.s32.totalorder %s4549_s16, %s5273_s24  ;;  %p3999_p6 = scmp.lt.s32.totalorder %s3997_s11, %s3992_s4 }
  0x6e   : > { %p3995_p5 = pnand %p3994_p0, %p3993_p12 }
  0x6f   : > { %p4000_p10 = por %p3999_p6, %p3998_p9 }
  0x70   : > { %p3996_p4 = pneg %p3995_p5 }
  0x72   : > { %p4001_p7 = pnand %p4000_p10, %p3996_p4 }
  0x74   : > { %4004 = shalt.err (!%p4001_p7)
}
  0x75   : > { %s4005_s19 = scalar_lea.vmem %s4557_s6, 384  ;;  %p4013_p5 = scmp.lt.s32.totalorder %s4557_s6, %s4557_s6 }
  0x76   : > { %p4006_p1 = scmp.ne.s32.totalorder %s4557_s6, %s4005_s19  ;;  %p4014_p13 = scmp.lt.s32.totalorder %s4005_s19, %s4005_s19 }
  0x78   : > { %p4008_p8 = pnand %p4006_p1, %p3994_p0  ;;  %p4015_p2 = por %p4014_p13, %p4013_p5 }
  0x7a   : > { %p4009_p12 = pneg %p4008_p8 }
  0x7c   : > { %p4016_p3 = pnand %p4015_p2, %p4009_p12 }
  0x7e   : > { %4019 = shalt.err (!%p4016_p3)
}
  0x7f   : > { %s4270_s27 = smov 128   ;;  %s4271_s4 = smov 8  }
  0x80   : > { %3674 = dma.hbm_to_vmem [thread:$0]  (!%p4564_p11), %s4549_s16, 384, %s4557_s6, [#allocation5], %s4270_s27, %s4270_s27, %s4271_s4  }
  0x81   : > { %s4031_s23 = scalar_lea.vmem %s4568_s15, 16  ;;  %p5277_p7 = scmp.ne.s32.totalorder %s5268_s18, 0 }
  0x82   : > { %p4032_p1 = scmp.ne.s32.totalorder %s4568_s15, %s4031_s23  ;;  %s4038_s25 = scalar_lea.vmem %s4568_s15, 32 }
  0x83   : > { %p4039_p13 = scmp.lt.s32.totalorder %s4568_s15, %s4568_s15  ;;  %p4040_p2 = scmp.lt.s32.totalorder %s4038_s25, %s4031_s23 }
  0x84   : > { %p4034_p8 = pnand %p4032_p1, %p5277_p7 }
  0x85   : > { %p4041_p3 = por %p4040_p2, %p4039_p13 }
  0x86   : > { %p4035_p0 = pneg %p4034_p8 }
  0x88   : > { %p4042_p4 = pnand %p4041_p3, %p4035_p0 }
  0x8a   : > { %4045 = shalt.err (!%p4042_p4)
}
  0x8b   : > { %p5278_p9 = scmp.ne.s32.totalorder %s5267_s10, 0  ;;  %s4272_s6 = smov [#allocation12]  }
  0x8c   : > { %s543_s16 = sshll.u32 %s4272_s6, 4  ;;  %s4273_s30 = smov [#allocation15]   ;;  %s544_s16 = int_to_ptr.vmem [resolvable:$true] %s543_s16 }
  0x8d   : > { %3680 = dma.hbm_to_vmem [thread:$0]  (!%p5278_p9), %s5204_s3, 16, %s4568_s15, [#allocation8]  }
  0x8e   : > { %s567_s26 = sshll.u32 %s4273_s30, 4  ;;  %s4057_s19 = scalar_lea.vmem %s544_s16, 16  ;;  %s568_s26 = int_to_ptr.vmem [resolvable:$true] %s567_s26 }
  0x8f   : > { %p4058_p11 = scmp.ne.s32.totalorder %s544_s16, %s4057_s19  ;;  %s4064_s27 = scalar_lea.vmem %s544_s16, 32 }
  0x90   : > { %p4065_p12 = scmp.lt.s32.totalorder %s544_s16, %s544_s16  ;;  %p4066_p5 = scmp.lt.s32.totalorder %s4064_s27, %s4057_s19 }
  0x91   : > { %p4060_p6 = pnand %p4058_p11, %p5277_p7 }
  0x92   : > { %p4067_p1 = por %p4066_p5, %p4065_p12 }
  0x93   : > { %p4061_p10 = pneg %p4060_p6 }
  0x95   : > { %p4068_p8 = pnand %p4067_p1, %p4061_p10 }
  0x97   : > { %4071 = shalt.err (!%p4068_p8)
}
  0x98   : > { %3686 = dma.hbm_to_vmem [thread:$0]  (!%p5278_p9), %s5206_s5, 16, %s544_s16, [#allocation11]  }
  0x99   : > { %s4083_s23 = scalar_lea.vmem %s568_s26, 16  ;;  %s4090_s25 = scalar_lea.vmem %s568_s26, 32 }
  0x9a   : > { %p4084_p0 = scmp.ne.s32.totalorder %s568_s26, %s4083_s23  ;;  %p4091_p3 = scmp.lt.s32.totalorder %s568_s26, %s568_s26 }
  0x9b   : > { %p4092_p4 = scmp.lt.s32.totalorder %s4090_s25, %s4083_s23 }
  0x9c   : > { %p4086_p13 = pnand %p4084_p0, %p5277_p7 }
  0x9d   : > { %p4093_p11 = por %p4092_p4, %p4091_p3 }
  0x9e   : > { %p4087_p2 = pneg %p4086_p13 }
  0xa0   : > { %p4094_p6 = pnand %p4093_p11, %p4087_p2 }
  0xa2   : > { %4097 = shalt.err (!%p4094_p6)
}
  0xa3   : > { %3692 = dma.hbm_to_vmem [thread:$0]  (!%p5278_p9), %s5208_s7, 16, %s568_s26, [#allocation14]  }
  0xa4   : > { %s4274_s6 = smov [#allocation18]  }
  0xa5   : > { %s591_s16 = sshll.u32 %s4274_s6, 4  ;;  %s592_s16 = int_to_ptr.vmem [resolvable:$true] %s591_s16 }
  0xa6   : > { %s4109_s30 = scalar_lea.vmem %s592_s16, 16  ;;  %s4116_s19 = scalar_lea.vmem %s592_s16, 32 }
  0xa7   : > { %p4110_p10 = scmp.ne.s32.totalorder %s592_s16, %s4109_s30  ;;  %p4117_p1 = scmp.lt.s32.totalorder %s592_s16, %s592_s16 }
  0xa8   : > { %p4118_p8 = scmp.lt.s32.totalorder %s4116_s19, %s4109_s30 }
  0xa9   : > { %p4112_p12 = pnand %p4110_p10, %p5277_p7 }
  0xaa   : > { %p4119_p0 = por %p4118_p8, %p4117_p1 }
  0xab   : > { %p4113_p5 = pneg %p4112_p12 }
  0xad   : > { %p4120_p13 = pnand %p4119_p0, %p4113_p5 }
  0xaf   : > { %4123 = shalt.err (!%p4120_p13)
}
  0xb0   : > { %3698 = dma.hbm_to_vmem [thread:$0]  (!%p5278_p9), %s5210_s9, 16, %s592_s16, [#allocation17]  }
  0xb1   : > { %p5279_p2 = scmp.ne.s32.totalorder %s5266_s21, 0 }
  0xb2   : > { %p5280_p3 = scmp.ne.s32.totalorder (!%p5279_p2), %s5274_s29, 0 }
  0xb3   : > { %628 = sbr.rel (%p5279_p2) target bundleno = 2905 (0xb59), region = 92 }
  0xb8   : > { %4195 = dma.done.wait (%p5280_p3), [#allocation5], 384  }
  0xb9   : > { %4197 = vsyncadd (%p5280_p3), [#allocation5], 4294966912  ;;  %p5281_p7 = scmp.ne.s32.totalorder %s5258_s17, 0 }
  0xbb   : > { %4199 = dma.done.wait (%p5281_p7), [#allocation8], 272  }
  0xbc   : > { %4201 = vsyncadd (%p5281_p7), [#allocation8], 4294967024 }
  0xbd   : > { %4203 = dma.done.wait (%p5281_p7), [#allocation11], 272  }
  0xbe   : > { %4205 = vsyncadd (%p5281_p7), [#allocation11], 4294967024 }
  0xbf   : > { %4207 = dma.done.wait (%p5281_p7), [#allocation14], 272  }
  0xc0   : > { %4209 = vsyncadd (%p5281_p7), [#allocation14], 4294967024 }
  0xc1   : > { %4211 = dma.done.wait (%p5281_p7), [#allocation17], 272  }
  0xc2   : > { %4213 = vsyncadd (%p5281_p7), [#allocation17], 4294967024  ;;  %s711_s21 = sand.u32 1, %s4224_s28   ;;  %p714_p9 = scmp.lt.s32.totalorder %s4248_s20, 1 }
  0xc3   : > { %s4649_s10 = sshll.u32 %s711_s21, 3  ;;  %s5282_s23 = sld [smem:[#allocation36_spill]] }
  0xc4   : > { %s715_s18 = scalar_select %p714_p9, %s4248_s20, 1 }
  0xc5   : > { %s713_s11 = scalar_lea.vmem [#allocation19], %s4649_s10  ;;  %p3382_p4 = scmp.ne.s32.totalorder %s4244_s1, 0 }
  0xc6   : > { %s3633_s29 = smul.u32 24, %s715_s18  ;;  %s4275_s17 = smov (!%p3382_p4), 112  }
  0xc7   : > { %723 = sbr.rel (%p3382_p4) target bundleno = 625 (0x271), region = 132  ;;  %s4276_s22 = smov (!%p3382_p4), 120  }
  0xc8   : > { %s4277_s6 = smov (!%p3382_p4), 104  }
  0xc9   : > { %s4655_s25 = scalar_lea.vmem %s5282_s23, %s3633_s29 }
  0xcc   : > { %v3838_v0 = vld [vmem:[#allocation10 + $0x8] sm:$0xff]   ;;  %v3839_v1 = vld [vmem:[#allocation13 + $0x8] sm:$0xff]   ;;  %v3841_v3 = vld [vmem:[#allocation13] sm:$0xff]   ;;  %vm760_vm0 = vcmask 261120   ;;  %v4278_v37 = vmov 1983009808   ;;  %v915_v39 = vlaneseq }
  0xcd   : > { %3516 = vmatprep.subr.bf16.mxu0 %v3838_v0  ;;  %v3840_v2 = vld [vmem:[#allocation10] sm:$0xff]   ;;  %3524 = vmatprep.subr.bf16.mxu1 %v3839_v1  ;;  %v724_v4 = vld [vmem:[%s4655_s25] sm:$0xff]  ;;  %v3383_v17 = vld [vmem:[#allocation12] ss:$0 sm:$0xff]  ;;  %v913_v38 = vunpack.c.l.s4 %v4278_v37  ;;  %v4279_v42 = vmov 1934713408  }
  0xce   : > { %3517 = vmatpush3.bf16.msra.mxu0 %v3838_v0  ;;  %3525 = vmatpush3.bf16.msra.mxu1 %v3839_v1  ;;  %v725_v5 = vld [vmem:[%s4655_s25 + $0x8] sm:$0xff]  ;;  %v727_v6 = vld [vmem:[#allocation4] sm:$0xff]  ;;  %v726_v10 = vld [vmem:[%s4655_s25 + $0x10] sm:$0xff]  ;;  %v916_v41 = vshrl.u32 %v915_v39, 7  ;;  %v944_v43 = vunpack.c.l.s4 %v4279_v42  ;;  %v4280_v55 = vmov 0   ;;  %vm1416_vm1 = vcmask 60416  }
  0xcf   : > { %3518 = vmatprep.subr.bf16.mxu0 %v3840_v2  ;;  %3526 = vmatprep.subr.bf16.mxu1 %v3841_v3  ;;  %v728_v7 = vld [vmem:[#allocation4 + $0x8] sm:$0xff]  ;;  %v730_v8 = vadd.f32 %v727_v6, %v724_v4  ;;  %v735_v9 = vpack.c.bf16 %v725_v5, %v724_v4  ;;  %v729_v11 = vld [vmem:[#allocation4 + $0x10] sm:$0xff]  ;;  %v736_v14 = vpack.c.bf16 %v726_v10, %v726_v10  ;;  %v914_v40 = vunpack.c.0.s8 %v913_v38 }
  0xd0   : > { %v731_v12 = vadd.f32 %v728_v7, %v725_v5  ;;  %v732_v13 = vadd.f32 %v729_v11, %v726_v10  ;;  %v3388_v18 = vld [vmem:[#allocation15] ss:$0 sm:$0xff]  ;;  %v945_v45 = vunpack.c.0.s8 %v944_v43 }
  0xd1   : > { %3528 = vmatprep.mubr.msk.bf16.mxu1 %vm760_vm0, %v735_v9  ;;  %v4666_v44 = vsub.s32 %v914_v40, %v916_v41 }
  0xd2   : > { %3519 = vmatpush3.bf16.msra.mxu0 %v3840_v2  ;;  %3527 = vmatpush3.bf16.msra.mxu1 %v3841_v3  ;;  %v733_v15 = vpack.c.bf16 %v731_v12, %v730_v8  ;;  %v734_v16 = vpack.c.bf16 %v732_v13, %v732_v13  ;;  %v4668_v48 = vsub.s32 %v945_v45, %v916_v41 }
  0xd4   : > { %3520 = vmatprep.mubr.msk.bf16.mxu0 %vm760_vm0, %v733_v15 }
  0xd5   : > { %3521 = vmatmul.mubr.msk.bf16.vlgmr.msra.gmra.mxu0 %vm760_vm0, %v734_v16  ;;  %3529 = vmatmul.mubr.msk.bf16.vlgmr.msra.gmra.mxu1 %vm760_vm0, %v736_v14 }
 0x195   : > { %v3522_v19 = vpop.f32.mrf.mxu0  ;;  %v3530_v20 = vpop.f32.mrf.mxu1 }
 0x196   : > { %v810_v21 = vadd.f32 %v3522_v19, %v3383_v17  ;;  %v887_v22 = vadd.f32 %v3530_v20, %v3388_v18 }
 0x197   : > { %v801_v23 = vpop.f32.mrf.mxu0  ;;  %v878_v24 = vpop.f32.mrf.mxu1 }
 0x198   : > { %v893_v25 = vpack.c.bf16 %v810_v21, %v810_v21  ;;  %v1430_v28 = vpack.c.bf16 %v887_v22, %v887_v22  ;;  %v802_v32 = vadd.f32 %v3383_v17, %v801_v23  ;;  %v879_v35 = vadd.f32 %v3388_v18, %v878_v24 }
 0x199   : > { %v3523_v26 = vpop.f32.mrf.mxu0  ;;  %v3531_v27 = vpop.f32.mrf.mxu1 }
 0x19a   : > { %903 = vrot.lane.b32.xlu1 %v893_v25, %s4275_s17  ;;  %898 = vrot.lane.b32.xlu0 %v893_v25, %s4276_s22  ;;  %v1049_v49 = vrot.slane %v893_v25, %v4666_v44  ;;  %v4679_v62 = vrot.slane %v1430_v28, %v4666_v44 }
 0x19b   : > { %v804_v29 = vpop.f32.mrf.mxu0  ;;  %v881_v31 = vpop.f32.mrf.mxu1 }
 0x19c   : > { %v805_v30 = vadd.f32 %v3383_v17, %v804_v29  ;;  %v882_v34 = vadd.f32 %v3388_v18, %v881_v31 }
 0x19e   : > { %1435 = vrot.lane.b32.xlu1 %v1430_v28, %s4276_s22  ;;  %908 = vrot.lane.b32.xlu0 %v893_v25, %s4277_s6  ;;  %v892_v33 = vpack.c.bf16 %v805_v30, %v802_v32  ;;  %v1429_v36 = vpack.c.bf16 %v882_v34, %v879_v35 }
 0x1a0   : > { %v911_v56 = vcombine.high %v892_v33, %v4280_v55  ;;  %v1448_v57 = vcombine.high %v1429_v36, %v4280_v55  ;;  %v4684_v1 = vrot.slane %v892_v33, %v4666_v44  ;;  %v4687_v2 = vrot.slane %v1429_v36, %v4666_v44 }
 0x1a2   : > { %906 = vrot.lane.b32.xlu1 %v892_v33, %s4277_s6  ;;  %896 = vrot.lane.b32.xlu0 %v892_v33, %s4276_s22  ;;  %v4690_v7 = vrot.slane %v911_v56, %v4666_v44  ;;  %v4693_v8 = vrot.slane %v1448_v57, %v4666_v44 }
 0x1a6   : > { %1433 = vrot.lane.b32.xlu1 %v1429_v36, %s4276_s22  ;;  %901 = vrot.lane.b32.xlu0 %v892_v33, %s4275_s17 }
 0x1aa   : > { %1443 = vrot.lane.b32.xlu1 %v1429_v36, %s4277_s6  ;;  %1438 = vrot.lane.b32.xlu0 %v1429_v36, %s4275_s17 }
 0x1ae   : > { %1445 = vrot.lane.b32.xlu1 %v1430_v28, %s4277_s6  ;;  %1440 = vrot.lane.b32.xlu0 %v1430_v28, %s4275_s17 }
 0x20c   : > { %v904_v46 = vpop.permute.xlu1 %903  ;;  %v899_v47 = vpop.permute.xlu0 %898 }
 0x20d   : > { %v1057_v50 = vrot.slane %v904_v46, %v4666_v44  ;;  %v1083_v61 = vrot.slane %v899_v47, %v4666_v44 }
 0x20f   : > { %v1058_v51 = vcombine.low %v1049_v49, %v1057_v50  ;;  %v1059_v52 = vcombine.high %v1049_v49, %v1057_v50 }
 0x210   : > { %v1436_v53 = vpop.permute.xlu1 %1435  ;;  %v909_v54 = vpop.permute.xlu0 %908 }
 0x211   : > { %v1066_v58 = vrot.slane %v1058_v51, %v4668_v48  ;;  %v1073_v59 = vrot.slane %v1059_v52, %v4668_v48  ;;  %v1091_v60 = vrot.slane %v909_v54, %v4666_v44  ;;  %v4696_v10 = vrot.slane %v1436_v53, %v4666_v44 }
 0x213   : > { %v1074_v63 = vcombine.high %v1066_v58, %v4280_v55  ;;  %v1075_v0 = vcombine.high %v1073_v59, %v4280_v55  ;;  %v1092_v3 = vcombine.low %v1083_v61, %v1091_v60  ;;  %v1093_v4 = vcombine.high %v1083_v61, %v1091_v60 }
 0x214   : > { %v907_v5 = vpop.permute.xlu1 %906  ;;  %v897_v6 = vpop.permute.xlu0 %896  ;;  %v1178_v9 = vshrl.u32 %v1066_v58, 16  ;;  %v1194_v18 = vshrl.u32 %v1073_v59, 16 }
 0x215   : > { %v992_v11 = vcombine.high %v907_v5, %v4280_v55  ;;  %v999_v12 = vrot.slane %v907_v5, %v4666_v44  ;;  %v1100_v13 = vrot.slane %v1092_v3, %v4668_v48  ;;  %v1107_v14 = vrot.slane %v1093_v4, %v4668_v48 }
 0x216   : > { %v977_v15 = vcombine.high %v897_v6, %v4280_v55  ;;  %v984_v16 = vrot.slane %v897_v6, %v4666_v44  ;;  %v1186_v17 = vshrl.u32 %v1074_v63, 16  ;;  %v1202_v19 = vshrl.u32 %v1075_v0, 16 }
 0x217   : > { %v1006_v20 = vrot.slane %v992_v11, %v4666_v44  ;;  %v1108_v21 = vcombine.high %v1100_v13, %v4280_v55  ;;  %v1109_v22 = vcombine.high %v1107_v14, %v4280_v55  ;;  %v1176_v23 = vpack.i.b16 %v1100_v13, %v1066_v58 }
 0x218   : > { %v1179_v24 = vshrl.u32 %v1100_v13, 16  ;;  %v1192_v25 = vpack.i.b16 %v1107_v14, %v1073_v59  ;;  %v1195_v26 = vshrl.u32 %v1107_v14, 16  ;;  %v991_v27 = vrot.slane %v977_v15, %v4666_v44  ;;  %v1434_v41 = vpop.permute.xlu1 %1433  ;;  %v902_v61 = vpop.permute.xlu0 %901 }
 0x219   : > { %v1007_v28 = vcombine.low %v984_v16, %v999_v12  ;;  %v1184_v30 = vpack.i.b16 %v1108_v21, %v1074_v63  ;;  %v1187_v31 = vshrl.u32 %v1108_v21, 16  ;;  %v1200_v32 = vpack.i.b16 %v1109_v22, %v1075_v0 }
 0x21a   : > { %v1180_v29 = vpack.i.b16 %v1179_v24, %v1178_v9  ;;  %v1196_v33 = vpack.i.b16 %v1195_v26, %v1194_v18  ;;  %v1203_v34 = vshrl.u32 %v1109_v22, 16  ;;  %v1306_v35 = vcombine.low %v1176_v23, %v1192_v25 }
 0x21b   : > { %v1008_v36 = vcombine.high %v984_v16, %v999_v12  ;;  %v1188_v37 = vpack.i.b16 %v1187_v31, %v1186_v17  ;;  %v1314_v38 = vcombine.low %v1184_v30, %v1200_v32  ;;  %v4709_v39 = vrot.slane %v1007_v28, %v4668_v48 }
 0x21c   : > { %v1023_v40 = vcombine.low %v991_v27, %v1006_v20  ;;  %v1204_v42 = vpack.i.b16 %v1203_v34, %v1202_v19  ;;  %v1313_v43 = vrot.slane %v1306_v35, %v4666_v44  ;;  %v1331_v45 = vcombine.low %v1180_v29, %v1196_v33  ;;  %v1444_v12 = vpop.permute.xlu1 %1443 }
 0x21d   : > { %v4713_v46 = vrot.slane %v1008_v36, %v4668_v48  ;;  %v1321_v47 = vrot.slane %v1314_v38, %v4666_v44  ;;  %v1024_v49 = vcombine.high %v991_v27, %v1006_v20  ;;  %v4721_v51 = vcombine.high %v4709_v39, %v4280_v55 }
 0x21e   : > { %v4717_v50 = vrot.slane %v1023_v40, %v4668_v48  ;;  %v1338_v52 = vrot.slane %v1331_v45, %v4666_v44  ;;  %v1339_v53 = vcombine.low %v1188_v37, %v1204_v42  ;;  %v1115_v56 = vshrl.u32 %v4709_v39, 16 }
 0x21f   : > { %v4726_v54 = vcombine.high %v4713_v46, %v4280_v55  ;;  %v1322_v57 = vcombine.low %v1313_v43, %v1321_v47  ;;  %v4730_v58 = vrot.slane %v1024_v49, %v4668_v48  ;;  %v1123_v60 = vshrl.u32 %v4721_v51, 16 }
 0x220   : > { %v4734_v59 = vcombine.high %v4717_v50, %v4280_v55  ;;  %v1346_v63 = vrot.slane %v1339_v53, %v4666_v44  ;;  %v1131_v0 = vshrl.u32 %v4713_v46, 16  ;;  %v1147_v4 = vshrl.u32 %v4717_v50, 16 }
 0x221   : > { %v1139_v3 = vshrl.u32 %v4726_v54, 16  ;;  %v1329_v5 = vrot.slane %v1322_v57, %v4668_v48  ;;  %v4744_v6 = vcombine.high %v4730_v58, %v4280_v55  ;;  %v1163_v11 = vshrl.u32 %v4730_v58, 16 }
 0x222   : > { %v1155_v9 = vshrl.u32 %v4734_v59, 16  ;;  %v1347_v13 = vcombine.low %v1338_v52, %v1346_v63  ;;  %v1514_v14 = vcombine.high %v1434_v41, %v4280_v55  ;;  %v4750_v15 = vrot.slane %v1434_v41, %v4666_v44 }
 0x223   : > { %v926_v16 = vcombine.high %v902_v61, %v4280_v55  ;;  %v1330_v17 = vcombine.high %v1329_v5, %v4280_v55  ;;  %v1371_v18 = vshrl.u32 %v1329_v5, 16  ;;  %v1171_v19 = vshrl.u32 %v4744_v6, 16 }
 0x224   : > { %v933_v20 = vrot.slane %v902_v61, %v4666_v44  ;;  %v1354_v21 = vrot.slane %v1347_v13, %v4668_v48  ;;  %v4758_v22 = vrot.slane %v1514_v14, %v4666_v44  ;;  %v1529_v24 = vcombine.high %v1444_v12, %v4280_v55 }
 0x225   : > { %v940_v23 = vrot.slane %v926_v16, %v4666_v44  ;;  %v1377_v25 = vshrl.u32 %v1330_v17, 16  ;;  %v4765_v28 = vrot.slane %v1444_v12, %v4666_v44 }
 0x226   : > { %v941_v26 = vcombine.low %v4684_v1, %v933_v20  ;;  %v942_v27 = vcombine.high %v4684_v1, %v933_v20  ;;  %v1355_v29 = vcombine.high %v1354_v21, %v4280_v55  ;;  %v1370_v30 = vpack.i.b16 %v1354_v21, %v1329_v5 }
 0x227   : > { %v1372_v31 = vshrl.u32 %v1354_v21, 16  ;;  %v957_v32 = vcombine.low %v4690_v7, %v940_v23  ;;  %v958_v35 = vcombine.high %v4690_v7, %v940_v23  ;;  %v4773_v36 = vrot.slane %v1529_v24, %v4666_v44 }
 0x228   : > { %v949_v33 = vrot.slane %v941_v26, %v4668_v48  ;;  %v956_v34 = vrot.slane %v942_v27, %v4668_v48  ;;  %v1376_v1 = vpack.i.b16 %v1355_v29, %v1330_v17  ;;  %v1378_v38 = vshrl.u32 %v1355_v29, 16 }
 0x229   : > { %v1373_v37 = vpack.i.b16 %v1372_v31, %v1371_v18  ;;  %v3395_v40 = vcombine.low %v1370_v30, %v1370_v30  ;;  %v965_v41 = vrot.slane %v957_v32, %v4668_v48  ;;  %v972_v42 = vrot.slane %v958_v35, %v4668_v48 }
 0x22a   : > { %v973_v43 = vcombine.high %v949_v33, %v4280_v55  ;;  %v974_v45 = vcombine.high %v956_v34, %v4280_v55  ;;  %v1379_v47 = vpack.i.b16 %v1378_v38, %v1377_v25  ;;  %v3401_v52 = vcombine.low %v1376_v1, %v1376_v1 }
 0x22b   : > { %v3398_v49 = vcombine.low %v1373_v37, %v1373_v37  ;;  %1419 = vst.msk [vmem:[#allocation2 + $0x8] sm:$0xf] %vm1416_vm1, %v3395_v40  ;;  %v1112_v7 = vpack.i.b16 %v4709_v39, %v949_v33  ;;  %v975_v53 = vcombine.high %v965_v41, %v4280_v55  ;;  %v976_v57 = vcombine.high %v972_v42, %v4280_v55 }
 0x22c   : > { %v1114_v61 = vshrl.u32 %v949_v33, 16  ;;  %v1120_v63 = vpack.i.b16 %v4721_v51, %v973_v43  ;;  %v3404_v5 = vcombine.low %v1379_v47, %v1379_v47  ;;  %1425 = vst.msk [vmem:[#allocation2 + $0x20] sm:$0xf] %vm1416_vm1, %v3401_v52  ;;  %v1122_v12 = vshrl.u32 %v973_v43, 16 }
 0x22d   : > { %1422 = vst.msk [vmem:[#allocation2 + $0x14] sm:$0xf] %vm1416_vm1, %v3398_v49  ;;  %v1128_v13 = vpack.i.b16 %v4713_v46, %v956_v34  ;;  %v1130_v14 = vshrl.u32 %v956_v34, 16  ;;  %v1136_v17 = vpack.i.b16 %v4726_v54, %v974_v45  ;;  %v1138_v18 = vshrl.u32 %v974_v45, 16  ;;  %v1439_v45 = vpop.permute.xlu0 %1438 }
 0x22e   : > { %v1116_v16 = vpack.i.b16 %v1115_v56, %v1114_v61  ;;  %v1144_v20 = vpack.i.b16 %v4717_v50, %v965_v41  ;;  %1428 = vst.msk [vmem:[#allocation2 + $0x2c] sm:$0xf] %vm1416_vm1, %v3404_v5  ;;  %v1124_v21 = vpack.i.b16 %v1123_v60, %v1122_v12  ;;  %v1146_v24 = vshrl.u32 %v965_v41, 16 }
 0x22f   : > { %v1132_v23 = vpack.i.b16 %v1131_v0, %v1130_v14  ;;  %v1152_v25 = vpack.i.b16 %v4734_v59, %v975_v53  ;;  %v1140_v46 = vpack.i.b16 %v1139_v3, %v1138_v18  ;;  %v1154_v26 = vshrl.u32 %v975_v53, 16 }
 0x230   : > { %v1160_v39 = vpack.i.b16 %v4730_v58, %v972_v42  ;;  %v1162_v56 = vshrl.u32 %v972_v42, 16  ;;  %v1148_v27 = vpack.i.b16 %v1147_v4, %v1146_v24  ;;  %v1168_v29 = vpack.i.b16 %v4744_v6, %v976_v57 }
 0x231   : > { %v1170_v30 = vshrl.u32 %v976_v57, 16  ;;  %v1206_v31 = vcombine.low %v1112_v7, %v1128_v13  ;;  %v1156_v51 = vpack.i.b16 %v1155_v9, %v1154_v26  ;;  %v1214_v0 = vcombine.low %v1120_v63, %v1136_v17  ;;  %v1441_v26 = vpop.permute.xlu0 %1440 }
 0x232   : > { %v1164_v60 = vpack.i.b16 %v1163_v11, %v1162_v56  ;;  %v1222_v54 = vcombine.low %v1144_v20, %v1160_v39  ;;  %v1230_v33 = vcombine.low %v1152_v25, %v1168_v29  ;;  %v1256_v34 = vcombine.low %v1116_v16, %v1132_v23 }
 0x233   : > { %v1172_v3 = vpack.i.b16 %v1171_v19, %v1170_v30  ;;  %v1213_v32 = vrot.slane %v1206_v31, %v4666_v44  ;;  %v1221_v50 = vrot.slane %v1214_v0, %v4666_v44  ;;  %v1264_v6 = vcombine.low %v1124_v21, %v1140_v46  ;;  %v1446_v46 = vpop.permute.xlu1 %1445 }
 0x234   : > { %v1229_v4 = vrot.slane %v1222_v54, %v4666_v44  ;;  %v1272_v35 = vcombine.low %v1148_v27, %v1164_v60  ;;  %v1237_v37 = vrot.slane %v1230_v33, %v4666_v44  ;;  %v1263_v59 = vrot.slane %v1256_v34, %v4666_v44 }
 0x235   : > { %v1280_v9 = vcombine.low %v1156_v51, %v1172_v3  ;;  %v1544_v58 = vcombine.low %v4750_v15, %v4765_v28  ;;  %v1238_v11 = vcombine.low %v1213_v32, %v1221_v50  ;;  %v1271_v19 = vrot.slane %v1264_v6, %v4666_v44 }
 0x236   : > { %v1279_v1 = vrot.slane %v1272_v35, %v4666_v44  ;;  %v1545_v38 = vcombine.high %v4750_v15, %v4765_v28  ;;  %v1246_v40 = vcombine.low %v1229_v4, %v1237_v37  ;;  %v1560_v43 = vcombine.low %v4758_v22, %v4773_v36 }
 0x237   : > { %v1287_v41 = vrot.slane %v1280_v9, %v4666_v44  ;;  %v4818_v42 = vrot.slane %v1544_v58, %v4668_v48  ;;  %v1245_v47 = vrot.slane %v1238_v11, %v4668_v48  ;;  %v1288_v49 = vcombine.low %v1263_v59, %v1271_v19 }
 0x238   : > { %v4824_v52 = vrot.slane %v1545_v38, %v4668_v48  ;;  %v1561_v7 = vcombine.high %v4758_v22, %v4773_v36  ;;  %v1253_v15 = vrot.slane %v1246_v40, %v4668_v48  ;;  %v4830_v53 = vrot.slane %v1560_v43, %v4668_v48 }
 0x239   : > { %v1296_v28 = vcombine.low %v1279_v1, %v1287_v41  ;;  %v4834_v57 = vcombine.high %v4818_v42, %v4280_v55  ;;  %v1295_v61 = vrot.slane %v1288_v49, %v4668_v48  ;;  %v1652_v22 = vshrl.u32 %v4818_v42, 16 }
 0x23a   : > { %v4838_v63 = vrot.slane %v1561_v7, %v4668_v48  ;;  %v4842_v5 = vcombine.high %v4824_v52, %v4280_v55  ;;  %v1254_v36 = vcombine.low %v1245_v47, %v1253_v15  ;;  %v1255_v12 = vcombine.high %v1245_v47, %v1253_v15 }
 0x23b   : > { %v1303_v13 = vrot.slane %v1296_v28, %v4668_v48  ;;  %v4848_v14 = vcombine.high %v4830_v53, %v4280_v55  ;;  %v1660_v17 = vshrl.u32 %v4834_v57, 16  ;;  %v1668_v18 = vshrl.u32 %v4824_v52, 16 }
 0x23c   : > { %v4852_v16 = vcombine.high %v4838_v63, %v4280_v55  ;;  %v1676_v20 = vshrl.u32 %v4842_v5, 16  ;;  %v1359_v24 = vshrl.u32 %v1254_v36, 16  ;;  %v1365_v25 = vshrl.u32 %v1255_v12, 16 }
 0x23d   : > { %v1304_v21 = vcombine.low %v1295_v61, %v1303_v13  ;;  %v1305_v23 = vcombine.high %v1295_v61, %v1303_v13  ;;  %v1684_v39 = vshrl.u32 %v4830_v53, 16  ;;  %v1692_v56 = vshrl.u32 %v4848_v14, 16 }
 0x23e   : > { %v1700_v27 = vshrl.u32 %v4838_v63, 16  ;;  %v1708_v29 = vshrl.u32 %v4852_v16, 16  ;;  %v1463_v0 = vcombine.high %v1439_v45, %v4280_v55  ;;  %v1470_v54 = vrot.slane %v1439_v45, %v4666_v44 }
 0x23f   : > { %v1358_v30 = vpack.i.b16 %v1304_v21, %v1254_v36  ;;  %v1360_v31 = vshrl.u32 %v1304_v21, 16  ;;  %v1364_v51 = vpack.i.b16 %v1305_v23, %v1255_v12  ;;  %v1366_v60 = vshrl.u32 %v1305_v23, 16 }
 0x240   : > { %v1628_v3 = vrot.slane %v1446_v46, %v4666_v44  ;;  %v4865_v32 = vrot.slane %v1441_v26, %v4666_v44  ;;  %v1477_v37 = vrot.slane %v1463_v0, %v4666_v44  ;;  %v1478_v59 = vcombine.low %v4687_v2, %v1470_v54 }
 0x241   : > { %v1361_v33 = vpack.i.b16 %v1360_v31, %v1359_v24  ;;  %v1367_v34 = vpack.i.b16 %v1366_v60, %v1365_v25  ;;  %v3393_v50 = vcombine.low %v1358_v30, %v1358_v30  ;;  %v3394_v4 = vcombine.high %v1358_v30, %v1358_v30 }
 0x242   : > { %v3399_v6 = vcombine.low %v1364_v51, %v1364_v51  ;;  %v3400_v35 = vcombine.high %v1364_v51, %v1364_v51  ;;  %v1479_v1 = vcombine.high %v4687_v2, %v1470_v54  ;;  %v1486_v38 = vrot.slane %v1478_v59, %v4668_v48 }
 0x243   : > { %v3396_v9 = vcombine.low %v1361_v33, %v1361_v33  ;;  %v3397_v58 = vcombine.high %v1361_v33, %v1361_v33  ;;  %v3402_v11 = vcombine.low %v1367_v34, %v1367_v34  ;;  %v3403_v19 = vcombine.high %v1367_v34, %v1367_v34  ;;  %1417 = vst.msk [vmem:[#allocation2] sm:$0xf] %vm1416_vm1, %v3393_v50 }
 0x244   : > { %1418 = vst.msk [vmem:[#allocation2 + $0x4] sm:$0xf] %vm1416_vm1, %v3394_v4  ;;  %1423 = vst.msk [vmem:[#allocation2 + $0x18] sm:$0xf] %vm1416_vm1, %v3399_v6  ;;  %v1494_v40 = vcombine.low %v4693_v8, %v1477_v37  ;;  %v1495_v41 = vcombine.high %v4693_v8, %v1477_v37  ;;  %v1629_v43 = vcombine.low %v4696_v10, %v1628_v3  ;;  %v1651_v61 = vshrl.u32 %v1486_v38, 16 }
 0x245   : > { %1424 = vst.msk [vmem:[#allocation2 + $0x1c] sm:$0xf] %vm1416_vm1, %v3400_v35  ;;  %1420 = vst.msk [vmem:[#allocation2 + $0xc] sm:$0xf] %vm1416_vm1, %v3396_v9  ;;  %v1630_v45 = vcombine.high %v4696_v10, %v1628_v3  ;;  %v1595_v2 = vcombine.low %v4679_v62, %v4865_v32  ;;  %v1596_v47 = vcombine.high %v4679_v62, %v4865_v32 }
 0x246   : > { %1421 = vst.msk [vmem:[#allocation2 + $0x10] sm:$0xf] %vm1416_vm1, %v3397_v58  ;;  %1426 = vst.msk [vmem:[#allocation2 + $0x24] sm:$0xf] %vm1416_vm1, %v3402_v11  ;;  %v1493_v8 = vrot.slane %v1479_v1, %v4668_v48  ;;  %v1502_v49 = vrot.slane %v1494_v40, %v4668_v48  ;;  %v1509_v7 = vrot.slane %v1495_v41, %v4668_v48 }
 0x247   : > { %1427 = vst.msk [vmem:[#allocation2 + $0x28] sm:$0xf] %vm1416_vm1, %v3403_v19  ;;  %v1510_v15 = vcombine.high %v1486_v38, %v4280_v55  ;;  %v1649_v28 = vpack.i.b16 %v4818_v42, %v1486_v38  ;;  %v4893_v36 = vrot.slane %v1629_v43, %v4668_v48  ;;  %v4896_v10 = vrot.slane %v1630_v45, %v4668_v48 }
 0x248   : > { %v1511_v12 = vcombine.high %v1493_v8, %v4280_v55  ;;  %v1512_v13 = vcombine.high %v1502_v49, %v4280_v55  ;;  %v1513_v21 = vcombine.high %v1509_v7, %v4280_v55  ;;  %v1653_v24 = vpack.i.b16 %v1652_v22, %v1651_v61 }
 0x249   : > { %v1657_v23 = vpack.i.b16 %v4834_v57, %v1510_v15  ;;  %v1659_v25 = vshrl.u32 %v1510_v15, 16  ;;  %v1665_v46 = vpack.i.b16 %v4824_v52, %v1493_v8  ;;  %v1667_v26 = vshrl.u32 %v1493_v8, 16 }
 0x24a   : > { %v1673_v30 = vpack.i.b16 %v4842_v5, %v1511_v12  ;;  %v1675_v31 = vshrl.u32 %v1511_v12, 16  ;;  %v1681_v51 = vpack.i.b16 %v4830_v53, %v1502_v49  ;;  %v1683_v60 = vshrl.u32 %v1502_v49, 16 }
 0x24b   : > { %v1661_v0 = vpack.i.b16 %v1660_v17, %v1659_v25  ;;  %v1669_v54 = vpack.i.b16 %v1668_v18, %v1667_v26  ;;  %v1689_v3 = vpack.i.b16 %v4848_v14, %v1512_v13  ;;  %v1691_v42 = vshrl.u32 %v1512_v13, 16 }
 0x24c   : > { %v1677_v22 = vpack.i.b16 %v1676_v20, %v1675_v31  ;;  %v1685_v33 = vpack.i.b16 %v1684_v39, %v1683_v60  ;;  %v1697_v34 = vpack.i.b16 %v4838_v63, %v1509_v7  ;;  %v1699_v50 = vshrl.u32 %v1509_v7, 16 }
 0x24d   : > { %v1693_v4 = vpack.i.b16 %v1692_v56, %v1691_v42  ;;  %v1705_v57 = vpack.i.b16 %v4852_v16, %v1513_v21  ;;  %v1707_v17 = vshrl.u32 %v1513_v21, 16  ;;  %v1743_v52 = vcombine.low %v1649_v28, %v1665_v46 }
 0x24e   : > { %v1701_v18 = vpack.i.b16 %v1700_v27, %v1699_v50  ;;  %v1751_v6 = vcombine.low %v1657_v23, %v1673_v30  ;;  %v1759_v35 = vcombine.low %v1681_v51, %v1697_v34  ;;  %v1793_v5 = vcombine.low %v1653_v24, %v1669_v54 }
 0x24f   : > { %v1709_v53 = vpack.i.b16 %v1708_v29, %v1707_v17  ;;  %v1750_v20 = vrot.slane %v1743_v52, %v4666_v44  ;;  %v1767_v39 = vcombine.low %v1689_v3, %v1705_v57  ;;  %v1801_v37 = vcombine.low %v1661_v0, %v1677_v22 }
 0x250   : > { %v1758_v14 = vrot.slane %v1751_v6, %v4666_v44  ;;  %v1766_v56 = vrot.slane %v1759_v35, %v4666_v44  ;;  %v1800_v59 = vrot.slane %v1793_v5, %v4666_v44  ;;  %v1809_v9 = vcombine.low %v1685_v33, %v1701_v18 }
 0x251   : > { %v1774_v63 = vrot.slane %v1767_v39, %v4666_v44  ;;  %v1808_v27 = vrot.slane %v1801_v37, %v4666_v44  ;;  %v1817_v58 = vcombine.low %v1693_v4, %v1709_v53  ;;  %v1645_v16 = vcombine.high %v4893_v36, %v4280_v55 }
 0x252   : > { %v1775_v29 = vcombine.low %v1750_v20, %v1758_v14  ;;  %v1816_v11 = vrot.slane %v1809_v9, %v4666_v44  ;;  %v1646_v19 = vcombine.high %v4896_v10, %v4280_v55  ;;  %v1716_v41 = vshrl.u32 %v4893_v36, 16 }
 0x253   : > { %v1783_v1 = vcombine.low %v1766_v56, %v1774_v63  ;;  %v1824_v38 = vrot.slane %v1817_v58, %v4666_v44  ;;  %v1825_v40 = vcombine.low %v1800_v59, %v1808_v27  ;;  %v1724_v45 = vshrl.u32 %v1645_v16, 16 }
 0x254   : > { %v1782_v43 = vrot.slane %v1775_v29, %v4668_v48  ;;  %v1732_v8 = vshrl.u32 %v4896_v10, 16  ;;  %v1603_v49 = vrot.slane %v1595_v2, %v4668_v48  ;;  %v1740_v28 = vshrl.u32 %v1646_v19, 16 }
 0x255   : > { %v1790_v7 = vrot.slane %v1783_v1, %v4668_v48  ;;  %v1833_v15 = vcombine.low %v1816_v11, %v1824_v38  ;;  %v1610_v61 = vrot.slane %v1596_v47, %v4668_v48  ;;  %v1832_v12 = vrot.slane %v1825_v40, %v4668_v48 }
 0x256   : > { %v1611_v13 = vcombine.high %v1603_v49, %v4280_v55  ;;  %v1713_v21 = vpack.i.b16 %v4893_v36, %v1603_v49  ;;  %v1715_v23 = vshrl.u32 %v1603_v49, 16 }
 0x257   : > { %v1791_v24 = vcombine.low %v1782_v43, %v1790_v7  ;;  %v1792_v25 = vcombine.high %v1782_v43, %v1790_v7  ;;  %v1840_v2 = vrot.slane %v1833_v15, %v4668_v48  ;;  %v1612_v46 = vcombine.high %v1610_v61, %v4280_v55 }
 0x258   : > { %v1717_v26 = vpack.i.b16 %v1716_v41, %v1715_v23  ;;  %v1721_v30 = vpack.i.b16 %v1645_v16, %v1611_v13  ;;  %v1723_v31 = vshrl.u32 %v1611_v13, 16  ;;  %v1729_v51 = vpack.i.b16 %v4896_v10, %v1610_v61 }
 0x259   : > { %v1841_v62 = vcombine.low %v1832_v12, %v1840_v2  ;;  %v1842_v32 = vcombine.high %v1832_v12, %v1840_v2  ;;  %v1896_v47 = vshrl.u32 %v1791_v24, 16  ;;  %v1902_v60 = vshrl.u32 %v1792_v25, 16 }
 0x25a   : > { %v1725_v0 = vpack.i.b16 %v1724_v45, %v1723_v31  ;;  %v1731_v54 = vshrl.u32 %v1610_v61, 16  ;;  %v1737_v3 = vpack.i.b16 %v1646_v19, %v1612_v46  ;;  %v1739_v36 = vshrl.u32 %v1612_v46, 16 }
 0x25b   : > { %v1895_v42 = vpack.i.b16 %v1841_v62, %v1791_v24  ;;  %v1897_v22 = vshrl.u32 %v1841_v62, 16  ;;  %v1901_v33 = vpack.i.b16 %v1842_v32, %v1792_v25  ;;  %v1903_v34 = vshrl.u32 %v1842_v32, 16 }
 0x25c   : > { %v1733_v50 = vpack.i.b16 %v1732_v8, %v1731_v54  ;;  %v1741_v4 = vpack.i.b16 %v1740_v28, %v1739_v36  ;;  %v1843_v57 = vcombine.low %v1713_v21, %v1729_v51  ;;  %v1851_v17 = vcombine.low %v1721_v30, %v1737_v3 }
 0x25d   : > { %v1898_v52 = vpack.i.b16 %v1897_v22, %v1896_v47  ;;  %v1904_v18 = vpack.i.b16 %v1903_v34, %v1902_v60  ;;  %v3405_v6 = vcombine.low %v1895_v42, %v1895_v42  ;;  %v3406_v10 = vcombine.high %v1895_v42, %v1895_v42 }
 0x25e   : > { %v3411_v35 = vcombine.low %v1901_v33, %v1901_v33  ;;  %v3412_v5 = vcombine.high %v1901_v33, %v1901_v33  ;;  %v1850_v53 = vrot.slane %v1843_v57, %v4666_v44  ;;  %v1858_v20 = vrot.slane %v1851_v17, %v4666_v44 }
 0x25f   : > { %v3408_v39 = vcombine.low %v1898_v52, %v1898_v52  ;;  %v3409_v37 = vcombine.high %v1898_v52, %v1898_v52  ;;  %v3414_v14 = vcombine.low %v1904_v18, %v1904_v18  ;;  %v3415_v56 = vcombine.high %v1904_v18, %v1904_v18  ;;  %1953 = vst.msk [vmem:[#allocation3] sm:$0xf] %vm1416_vm1, %v3405_v6 }
 0x260   : > { %1954 = vst.msk [vmem:[#allocation3 + $0x4] sm:$0xf] %vm1416_vm1, %v3406_v10  ;;  %1959 = vst.msk [vmem:[#allocation3 + $0x18] sm:$0xf] %vm1416_vm1, %v3411_v35  ;;  %v1859_v59 = vcombine.low %v1850_v53, %v1858_v20  ;;  %v1868_v9 = vcombine.low %v1717_v26, %v1733_v50  ;;  %v1876_v63 = vcombine.low %v1725_v0, %v1741_v4 }
 0x261   : > { %1960 = vst.msk [vmem:[#allocation3 + $0x1c] sm:$0xf] %vm1416_vm1, %v3412_v5  ;;  %1956 = vst.msk [vmem:[#allocation3 + $0xc] sm:$0xf] %vm1416_vm1, %v3408_v39 }
 0x262   : > { %1957 = vst.msk [vmem:[#allocation3 + $0x10] sm:$0xf] %vm1416_vm1, %v3409_v37  ;;  %1962 = vst.msk [vmem:[#allocation3 + $0x24] sm:$0xf] %vm1416_vm1, %v3414_v14  ;;  %v1866_v27 = vrot.slane %v1859_v59, %v4668_v48  ;;  %v1875_v58 = vrot.slane %v1868_v9, %v4666_v44  ;;  %v1883_v16 = vrot.slane %v1876_v63, %v4666_v44 }
 0x263   : > { %1963 = vst.msk [vmem:[#allocation3 + $0x28] sm:$0xf] %vm1416_vm1, %v3415_v56 }
 0x264   : > { %v1884_v29 = vcombine.low %v1875_v58, %v1883_v16  ;;  %v1867_v11 = vcombine.high %v1866_v27, %v4280_v55  ;;  %v1908_v40 = vshrl.u32 %v1866_v27, 16 }
 0x266   : > { %v1891_v19 = vrot.slane %v1884_v29, %v4668_v48  ;;  %v1914_v43 = vshrl.u32 %v1867_v11, 16 }
 0x268   : > { %v1892_v1 = vcombine.high %v1891_v19, %v4280_v55  ;;  %v1907_v38 = vpack.i.b16 %v1891_v19, %v1866_v27  ;;  %v1909_v41 = vshrl.u32 %v1891_v19, 16 }
 0x26a   : > { %v1910_v45 = vpack.i.b16 %v1909_v41, %v1908_v40  ;;  %v1913_v8 = vpack.i.b16 %v1892_v1, %v1867_v11  ;;  %v1915_v49 = vshrl.u32 %v1892_v1, 16  ;;  %v3407_v7 = vcombine.low %v1907_v38, %v1907_v38 }
 0x26c   : > { %v1916_v15 = vpack.i.b16 %v1915_v49, %v1914_v43  ;;  %v3410_v28 = vcombine.low %v1910_v45, %v1910_v45  ;;  %v3413_v61 = vcombine.low %v1913_v8, %v1913_v8  ;;  %1955 = vst.msk [vmem:[#allocation3 + $0x8] sm:$0xf] %vm1416_vm1, %v3407_v7 }
 0x26e   : > { %v3416_v44 = vcombine.low %v1916_v15, %v1916_v15  ;;  %1958 = vst.msk [vmem:[#allocation3 + $0x14] sm:$0xf] %vm1416_vm1, %v3410_v28  ;;  %1961 = vst.msk [vmem:[#allocation3 + $0x20] sm:$0xf] %vm1416_vm1, %v3413_v61 }
 0x270   : > { %1964 = vst.msk [vmem:[#allocation3 + $0x2c] sm:$0xf] %vm1416_vm1, %v3416_v44 }
 0x271 PF: > { %v3842_v48 = vld [vmem:[#allocation7 + $0x8] sm:$0xff]   ;;  %v4281_v55 = vmov 0.0   ;;  %v3843_v12 = vld [vmem:[#allocation7] sm:$0xff]   ;;  %vm4282_vm2 = vmmov 0   ;;  %s3417_s16 = sshll.u32 %s4244_s1, 3  ;;  %vm1995_vm3 = vcmask 261120   ;;  %v2051_v34 = vlaneseq }
 0x272   : > { %3532 = vmatprep.subr.bf16.mxu0 %v4281_v55  ;;  %3540 = vmatprep.subr.bf16.mxu1 %v4281_v55  ;;  %s1966_s30 = scalar_lea.vmem %s4655_s25, %s3417_s16  ;;  %s1968_s19 = scalar_lea.vmem [#allocation4], %s3417_s16  ;;  %v3418_v25 = vld [vmem:[#allocation9] ss:$0 sm:$0xff]  ;;  %vm2229_vm4 = vcmask 64512   ;;  %v3845_v47 = vld [vmem:[#allocation2 + $0x14] ss:$0 sps:$4 sm:$0xff]  }
 0x273   : > { %3533 = vmatpush3.bf16.msra.mxu0 %v3842_v48  ;;  %3536 = vmatprep.mubr.msk.bf16.mxu0 %vm4282_vm2, %v4281_v55  ;;  %v4980_v13 = vld [vmem:[%s1966_s30] sm:$0xff]  ;;  %v3844_v31 = vld [vmem:[#allocation2 + $0x8] ss:$0 sps:$4 sm:$0xff]   ;;  %s4283_s27 = smov 104   ;;  %s4284_s4 = smov 120   ;;  %v2294_v0 = vsel %vm2229_vm4, %v3845_v47, 0 }
 0x274   : > { %3534 = vmatprep.subr.bf16.mxu0 %v4281_v55  ;;  %3544 = vmatprep.mubr.msk.bf16.mxu1 %vm4282_vm2, %v4281_v55  ;;  %v1969_v21 = vld [vmem:[%s1968_s19] sm:$0xff]  ;;  %v2237_v32 = vsel %vm2229_vm4, %v3844_v31, 0  ;;  %s4285_s18 = smov 112   ;;  %v3847_v3 = vld [vmem:[#allocation2 + $0xc] sm:$0xff]   ;;  %v4286_v22 = vmov 1983009808  }
 0x275   : > { %v1970_v23 = vadd.f32 %v1969_v21, %v4980_v13  ;;  %3541 = vmatpush3.bf16.xpose.msra.mxu1 %v2237_v32  ;;  %v3846_v54 = vld [vmem:[#allocation2] sm:$0xff]   ;;  %v2291_v42 = vsel %vm2229_vm4, %v3847_v3, 0  ;;  %v2049_v33 = vunpack.c.l.s4 %v4286_v22  ;;  %v4287_v50 = vmov 1934713408   ;;  %v3849_v3 = vld [vmem:[#allocation2 + $0x2c] ss:$0 sps:$4 sm:$0xff]  }
 0x276   : > { %3542 = vmatprep.subr.bf16.mxu1 %v4281_v55  ;;  %v2234_v36 = vsel %vm2229_vm4, %v3846_v54, 0  ;;  %v2066_v4 = vunpack.c.l.s4 %v4287_v50  ;;  %v2052_v17 = vshrl.u32 %v2051_v34, 7  ;;  %v4288_v58 = vmov 0   ;;  %s4289_s29 = smov 16   ;;  %s4290_s26 = smov 8  }
 0x277   : > { %3535 = vmatpush3.bf16.msra.mxu0 %v3843_v12  ;;  %v1971_v24 = vpack.c.bf16 %v1970_v23, %v1970_v23  ;;  %v2050_v57 = vunpack.c.0.s8 %v2049_v33  ;;  %vm2459_vm6 = vcmask 195584   ;;  %vm2524_vm7 = vcmask 1043456   ;;  %s4291_s15 = smov 24   ;;  %s5285_s30 = sld [smem:[#allocation43_spill]] }
 0x278   : > { %3548 = vmatprep.subr.bf16.mxu0 %v4281_v55  ;;  %v2067_v52 = vunpack.c.0.s8 %v2066_v4  ;;  %v2408_v4 = vsel %vm2229_vm4, %v3849_v3, 0  ;;  %vm2890_vm8 = vcmask 130048   ;;  %vm3099_vm9 = vcmask 523264   ;;  %s5287_s23 = sld [smem:[#allocation45_spill]]  ;;  %s3190_s16 = sshll.u32 %s713_s11, 4  ;;  %s3191_s16 = int_to_ptr.vmem [resolvable:$true] %s3190_s16 }
 0x279   : > { %v4996_v18 = vsub.s32 %v2050_v57, %v2052_v17  ;;  %v3850_v57 = vld [vmem:[#allocation2 + $0x18] sm:$0xff]   ;;  %s5288_s22 = sld [smem:[#allocation46_spill]]  ;;  %p5291_p6 = scmp.ne.s32.totalorder %s5261_s13, 0 }
 0x27a   : > { %3537 = vmatmul.mubr.msk.bf16.vlgmr.msra.gmra.mxu0 %vm1995_vm3, %v1971_v24  ;;  %v4999_v5 = vsub.s32 %v2067_v52, %v2052_v17  ;;  %v3851_v17 = vld [vmem:[#allocation2 + $0x24] sm:$0xff]   ;;  %v2348_v52 = vsel %vm2229_vm4, %v3850_v57, 0 }
 0x27b   : > { %3552 = vmatprep.mubr.msk.bf16.mxu0 %vm4282_vm2, %v4281_v55  ;;  %3549 = vmatpush3.bf16.xpose.msra.mxu0 %v2294_v0  ;;  %v3848_v0 = vld [vmem:[#allocation2 + $0x20] ss:$0 sps:$4 sm:$0xff]  }
 0x27c   : > { %3550 = vmatprep.subr.bf16.mxu0 %v4281_v55 }
 0x27d   : > { %3543 = vmatpush3.bf16.xpose.msra.mxu1 %v2234_v36 }
 0x27e   : > { %3556 = vmatprep.subr.bf16.mxu1 %v4281_v55 }
 0x283   : > { %3551 = vmatpush3.bf16.xpose.msra.mxu0 %v2291_v42  ;;  %v2351_v42 = vsel %vm2229_vm4, %v3848_v0, 0 }
 0x284   : > { %3564 = vmatprep.subr.bf16.mxu0 %v4281_v55 }
 0x33a   : > { %v2033_v2 = vpop.f32.mrf.mxu0 }
 0x33b   : > { %v2034_v46 = vadd.f32 %v3418_v25, %v2033_v2 }
 0x33c   : > { %v3538_v26 = vpop.f32.mrf.mxu0 }
 0x33d   : > { %v2039_v30 = vmul.f32 2.828427, %v2034_v46 }
 0x33e   : > { %v2036_v51 = vpop.f32.mrf.mxu0 }
 0x33f   : > { %v2040_v62 = vpack.c.bf16 %v2039_v30, %v2039_v30 }
 0x340   : > { %v3539_v60 = vpop.f32.mrf.mxu0 }
 0x341   : > { %2046 = vrot.lane.b32.xlu1 %v2040_v62, %s4283_s27  ;;  %2042 = vrot.lane.b32.xlu0 %v2040_v62, %s4284_s4  ;;  %v2054_v59 = vrot.slane %v2040_v62, %v4996_v18  ;;  %s5286_s4 = sld [smem:[#allocation44_spill]] }
 0x345   : > { %2044 = vrot.lane.b32.xlu0 %v2040_v62, %s4285_s18  ;;  %s5283_s18 = sld [smem:[#allocation41_spill]] }
 0x3b3   : > { %v2047_v6 = vpop.permute.xlu1 %2046  ;;  %v2043_v10 = vpop.permute.xlu0 %2042 }
 0x3b4   : > { %v2096_v35 = vrot.slane %v2047_v6, %v4996_v18  ;;  %v2088_v53 = vrot.slane %v2043_v10, %v4996_v18  ;;  %v2405_v6 = vsel %vm2229_vm4, %v3851_v17, 0 }
 0x3b6   : > { %v2097_v20 = vcombine.low %v2088_v53, %v2096_v35  ;;  %v2098_v39 = vcombine.high %v2088_v53, %v2096_v35 }
 0x3b7   : > { %v2045_v37 = vpop.permute.xlu0 %2044 }
 0x3b8   : > { %v2105_v14 = vrot.slane %v2097_v20, %v4999_v5  ;;  %v2062_v56 = vrot.slane %v2045_v37, %v4996_v18  ;;  %v2112_v9 = vrot.slane %v2098_v39, %v4999_v5 }
 0x3ba   : > { %v2063_v63 = vcombine.low %v2054_v59, %v2062_v56  ;;  %v2064_v27 = vcombine.high %v2054_v59, %v2062_v56  ;;  %v2113_v16 = vcombine.high %v2105_v14, %v4288_v58  ;;  %v2114_v19 = vcombine.high %v2112_v9, %v4288_v58 }
 0x3bb   : > { %v2120_v1 = vshrl.u32 %v2105_v14, 16  ;;  %v2136_v8 = vshrl.u32 %v2112_v9, 16 }
 0x3bc   : > { %v2071_v29 = vrot.slane %v2063_v63, %v4999_v5  ;;  %v2078_v11 = vrot.slane %v2064_v27, %v4999_v5  ;;  %v2128_v45 = vshrl.u32 %v2113_v16, 16  ;;  %v2144_v48 = vshrl.u32 %v2114_v19, 16 }
 0x3be   : > { %v2079_v38 = vcombine.high %v2071_v29, %v4288_v58  ;;  %v2080_v40 = vcombine.high %v2078_v11, %v4288_v58  ;;  %v2117_v41 = vpack.i.b16 %v2105_v14, %v2071_v29  ;;  %v2119_v43 = vshrl.u32 %v2071_v29, 16 }
 0x3bf   : > { %v2133_v49 = vpack.i.b16 %v2112_v9, %v2078_v11  ;;  %v2135_v7 = vshrl.u32 %v2078_v11, 16  ;;  %v2451_v14 = vand.u32 127, %v2051_v34 }
 0x3c0   : > { %v2121_v15 = vpack.i.b16 %v2120_v1, %v2119_v43  ;;  %v2125_v28 = vpack.i.b16 %v2113_v16, %v2079_v38  ;;  %v2127_v61 = vshrl.u32 %v2079_v38, 16  ;;  %v2141_v44 = vpack.i.b16 %v2114_v19, %v2080_v40 }
 0x3c1   : > { %v2137_v12 = vpack.i.b16 %v2136_v8, %v2135_v7  ;;  %v2143_v21 = vshrl.u32 %v2080_v40, 16  ;;  %v2147_v23 = vcombine.low %v2117_v41, %v2133_v49  ;;  %vm2452_vm5 = vcmp.lt.s32.totalorder %v2451_v14, 20  ;;  %v3852_v49 = vld [vmem:[#allocation3 + $0x8] ss:$0 sps:$4 sm:$0xff]  }
 0x3c2   : > { %v2129_v24 = vpack.i.b16 %v2128_v45, %v2127_v61  ;;  %v2155_v25 = vcombine.low %v2125_v28, %v2141_v44  ;;  %v2526_v61 = vsel %vm2524_vm7, %v3852_v49, 0 }
 0x3c3   : > { %v2145_v2 = vpack.i.b16 %v2144_v48, %v2143_v21  ;;  %v2172_v46 = vcombine.low %v2121_v15, %v2137_v12  ;;  %v2154_v26 = vrot.slane %v2147_v23, %v4996_v18  ;;  %v3853_v21 = vld [vmem:[#allocation3 + $0x14] ss:$0 sps:$4 sm:$0xff]  }
 0x3c4   : > { %v2162_v30 = vrot.slane %v2155_v25, %v4996_v18  ;;  %v2581_v23 = vsel %vm2524_vm7, %v3853_v21, 0  ;;  %v3855_v25 = vld [vmem:[#allocation3 + $0xc] sm:$0xff]  }
 0x3c5   : > { %v2180_v31 = vcombine.low %v2129_v24, %v2145_v2  ;;  %v2179_v62 = vrot.slane %v2172_v46, %v4996_v18  ;;  %v3854_v24 = vld [vmem:[#allocation3] sm:$0xff]  }
 0x3c6   : > { %v2163_v51 = vcombine.low %v2154_v26, %v2162_v30 }
 0x3c7   : > { %v2187_v32 = vrot.slane %v2180_v31, %v4996_v18 }
 0x3c8   : > { %v2170_v47 = vrot.slane %v2163_v51, %v4999_v5 }
 0x3c9   : > { %v2188_v60 = vcombine.low %v2179_v62, %v2187_v32  ;;  %v3856_v62 = vld [vmem:[#allocation3 + $0x20] ss:$0 sps:$4 sm:$0xff]  }
 0x3ca   : > { %v2200_v22 = vshrl.u32 %v2170_v47, 16  ;;  %v2171_v35 = vcombine.high %v2170_v47, %v4288_v58  ;;  %v2636_v3 = vsel %vm2524_vm7, %v3856_v62, 0 }
 0x3cb   : > { %v2195_v54 = vrot.slane %v2188_v60, %v4999_v5 }
 0x3cc   : > { %v2206_v39 = vshrl.u32 %v2171_v35, 16 }
 0x3cd   : > { %v2199_v36 = vpack.i.b16 %v2195_v54, %v2170_v47  ;;  %v2201_v33 = vshrl.u32 %v2195_v54, 16  ;;  %v2196_v10 = vcombine.high %v2195_v54, %v4288_v58  ;;  %v3857_v47 = vld [vmem:[#allocation3 + $0x2c] ss:$0 sps:$4 sm:$0xff]  }
 0x3cf   : > { %3545 = vmatmul.mubr.msk.bf16.vlgmr.msra.gmra.mxu1 %vm2229_vm4, %v2199_v36  ;;  %v2202_v50 = vpack.i.b16 %v2201_v33, %v2200_v22  ;;  %v2207_v53 = vshrl.u32 %v2196_v10, 16  ;;  %v2205_v20 = vpack.i.b16 %v2196_v10, %v2171_v35  ;;  %v3859_v10 = vld [vmem:[#allocation3 + $0x24] sm:$0xff]  }
 0x3d0   : > { %3557 = vmatpush3.bf16.xpose.msra.mxu1 %v2351_v42  ;;  %3560 = vmatprep.mubr.msk.bf16.mxu1 %vm4282_vm2, %v4281_v55 }
 0x3d1   : > { %3553 = vmatmul.mubr.msk.bf16.vlgmr.msra.gmra.mxu0 %vm2229_vm4, %v2202_v50  ;;  %3558 = vmatprep.subr.bf16.mxu1 %v4281_v55  ;;  %v2208_v37 = vpack.i.b16 %v2207_v53, %v2206_v39 }
 0x3d2   : > { %3565 = vmatpush3.bf16.xpose.msra.mxu0 %v2408_v4  ;;  %3568 = vmatprep.mubr.msk.bf16.mxu0 %vm4282_vm2, %v4281_v55  ;;  %v2691_v4 = vsel %vm2524_vm7, %v3857_v47, 0 }
 0x3d3   : > { %3566 = vmatprep.subr.bf16.mxu0 %v4281_v55 }
 0x3d8   : > { %3559 = vmatpush3.bf16.xpose.msra.mxu1 %v2348_v52 }
 0x3d9   : > { %3572 = vmatprep.subr.bf16.mxu1 %v4281_v55 }
 0x3da   : > { %3567 = vmatpush3.bf16.xpose.msra.mxu0 %v2405_v6  ;;  %v3858_v6 = vld [vmem:[#allocation3 + $0x18] sm:$0xff]  }
 0x3db   : > { %3580 = vmatprep.subr.bf16.mxu0 %v4281_v55 }
 0x3df   : > { %3561 = vmatmul.mubr.msk.bf16.vlgmr.msra.gmra.mxu1 %vm2229_vm4, %v2205_v20 }
 0x3e0   : > { %3576 = vmatprep.mubr.msk.bf16.mxu1 %vm4282_vm2, %v4281_v55  ;;  %3573 = vmatpush3.bf16.msra.mxu1 %v2526_v61 }
 0x3e1   : > { %3569 = vmatmul.mubr.msk.bf16.vlgmr.msra.gmra.mxu0 %vm2229_vm4, %v2208_v37  ;;  %3574 = vmatprep.subr.bf16.mxu1 %v4281_v55 }
 0x3e2   : > { %3584 = vmatprep.mubr.msk.bf16.mxu0 %vm4282_vm2, %v4281_v55  ;;  %3581 = vmatpush3.bf16.msra.mxu0 %v2581_v23 }
 0x3e3   : > { %3582 = vmatprep.subr.bf16.mxu0 %v4281_v55 }
 0x3e4   : > { %3575 = vmatpush3.bf16.msra.mxu1 %v3854_v24 }
 0x3e5   : > { %3588 = vmatprep.subr.bf16.mxu1 %v4281_v55 }
 0x3e6   : > { %3583 = vmatpush3.bf16.msra.mxu0 %v3855_v25 }
 0x3e7   : > { %3596 = vmatprep.subr.bf16.mxu0 %v4281_v55 }
 0x48f   : > { %v2273_v56 = vpop.f32.mrf.mxu1 }
 0x490   : > { %v2455_v59 = vsel %vm2452_vm5, %v2273_v56, -1e+30  ;;  %v3860_v56 = vld [vmem:[#allocation16 + $0x8] sm:$0xff]  }
 0x491   : > { %v3546_v9 = vpop.f32.mrf.mxu1  ;;  %v2330_v63 = vpop.f32.mrf.mxu0  ;;  %v2460_v27 = vsel %vm2459_vm6, %v2455_v59, -inf }
 0x492   : > { %v2456_v58 = vsel %vm2452_vm5, %v2330_v63, -1e+30  ;;  %2461 = vmax.xlane.f32.xlu1 %v2460_v27 }
 0x493   : > { %v2276_v16 = vpop.f32.mrf.mxu1  ;;  %v3554_v29 = vpop.f32.mrf.mxu0  ;;  %v2463_v11 = vsel %vm2459_vm6, %v2456_v58, -inf }
 0x494   : > { %2464 = vmax.xlane.f32.xlu0 %v2463_v11 }
 0x495   : > { %v3547_v19 = vpop.f32.mrf.mxu1  ;;  %v2333_v1 = vpop.f32.mrf.mxu0 }
 0x497   : > { %v3555_v34 = vpop.f32.mrf.mxu0 }
 0x49f   : > { %v2387_v38 = vpop.f32.mrf.mxu1 }
 0x4a0   : > { %v2457_v40 = vsel %vm2452_vm5, %v2387_v38, -1e+30 }
 0x4a1   : > { %v3562_v41 = vpop.f32.mrf.mxu1  ;;  %v2444_v43 = vpop.f32.mrf.mxu0  ;;  %v2466_v45 = vsel %vm2459_vm6, %v2457_v40, -inf }
 0x4a2   : > { %v2458_v8 = vsel %vm2452_vm5, %v2444_v43, -1e+30  ;;  %2467 = vmax.xlane.f32.xlu0 %v2466_v45 }
 0x4a3   : > { %v2390_v7 = vpop.f32.mrf.mxu1  ;;  %v3570_v15 = vpop.f32.mrf.mxu0  ;;  %v2469_v28 = vsel %vm2459_vm6, %v2458_v8, -inf }
 0x4a4   : > { %2470 = vmax.xlane.f32.xlu1 %v2469_v28 }
 0x4a5   : > { %v3563_v44 = vpop.f32.mrf.mxu1  ;;  %v2447_v48 = vpop.f32.mrf.mxu0 }
 0x4a7   : > { %v3571_v12 = vpop.f32.mrf.mxu0 }
 0x51b   : > { %v2462_v2 = vpop.xlane.xlu1 %2461 }
 0x51c   : > { %v2472_v46 = vsub.f32 %v2455_v59, %v2462_v2 }
 0x51d   : > { %v2465_v26 = vpop.xlane.xlu0 %2464 }
 0x51e   : > { %v2476_v30 = vmul.f32 1.442695, %v2472_v46  ;;  %v2473_v31 = vsub.f32 %v2456_v58, %v2465_v26 }
 0x520   : > { %3868 = vpow2.f32 %v2476_v30  ;;  %v2478_v51 = vmul.f32 1.442695, %v2473_v31 }
 0x522   : > { %3870 = vpow2.f32 %v2478_v51 }
 0x52b   : > { %v2468_v32 = vpop.xlane.xlu0 %2467 }
 0x52c   : > { %v2474_v60 = vsub.f32 %v2457_v40, %v2468_v32 }
 0x52d   : > { %v3869_v0 = vpop.eup %3868  ;;  %v2471_v54 = vpop.xlane.xlu1 %2470 }
 0x52e   : > { %v2480_v36 = vmul.f32 1.442695, %v2474_v60  ;;  %v2475_v42 = vsub.f32 %v2458_v8, %v2471_v54  ;;  %v2484_v22 = vsel %vm2459_vm6, %v3869_v0, 0.0  ;;  %v2496_v33 = vpack.c.bf16 %v3869_v0, %v3869_v0  ;;  %v3861_v54 = vld [vmem:[#allocation16] sm:$0xff]  }
 0x52f   : > { %v3871_v50 = vpop.eup %3870  ;;  %2485 = vadd.xlane.f32.xlu0 %v2484_v22 }
 0x530   : > { %3872 = vpow2.f32 %v2480_v36  ;;  %v2482_v57 = vmul.f32 1.442695, %v2475_v42  ;;  %3577 = vmatmul.mubr.msk.bf16.vlgmr.msra.gmra.mxu1 %vm2459_vm6, %v2496_v33  ;;  %v2487_v17 = vsel %vm2459_vm6, %v3871_v50, 0.0  ;;  %v2497_v52 = vpack.c.bf16 %v3871_v50, %v3871_v50 }
 0x531   : > { %2488 = vadd.xlane.f32.xlu1 %v2487_v17  ;;  %3589 = vmatpush3.bf16.msra.mxu1 %v2636_v3 }
 0x532   : > { %3874 = vpow2.f32 %v2482_v57  ;;  %3585 = vmatmul.mubr.msk.bf16.vlgmr.msra.gmra.mxu0 %vm2459_vm6, %v2497_v52  ;;  %3590 = vmatprep.subr.bf16.mxu1 %v4281_v55 }
 0x533   : > { %3597 = vmatpush3.bf16.msra.mxu0 %v2691_v4  ;;  %3592 = vmatprep.mubr.msk.bf16.mxu1 %vm4282_vm2, %v4281_v55 }
 0x534   : > { %3598 = vmatprep.subr.bf16.mxu0 %v4281_v55  ;;  %3600 = vmatprep.mubr.msk.bf16.mxu0 %vm4282_vm2, %v4281_v55 }
 0x535   : > { %3591 = vmatpush3.bf16.msra.mxu1 %v3858_v6 }
 0x536   : > { %3604 = vmatprep.subr.bf16.mxu1 %v4281_v55 }
 0x537   : > { %3599 = vmatpush3.bf16.msra.mxu0 %v3859_v10 }
 0x538   : > { %3612 = vmatprep.subr.bf16.mxu0 %v4281_v55 }
 0x53d   : > { %v3873_v35 = vpop.eup %3872 }
 0x53e   : > { %v2490_v53 = vsel %vm2459_vm6, %v3873_v35, 0.0  ;;  %v2498_v20 = vpack.c.bf16 %v3873_v35, %v3873_v35 }
 0x53f   : > { %v3875_v39 = vpop.eup %3874  ;;  %2491 = vadd.xlane.f32.xlu0 %v2490_v53 }
 0x540   : > { %3593 = vmatmul.mubr.msk.bf16.vlgmr.msra.gmra.mxu1 %vm2459_vm6, %v2498_v20  ;;  %v2493_v37 = vsel %vm2459_vm6, %v3875_v39, 0.0  ;;  %v2499_v14 = vpack.c.bf16 %v3875_v39, %v3875_v39 }
 0x541   : > { %2494 = vadd.xlane.f32.xlu1 %v2493_v37  ;;  %3608 = vmatprep.mubr.msk.bf16.mxu1 %vm4282_vm2, %v4281_v55 }
 0x542   : > { %3601 = vmatmul.mubr.msk.bf16.vlgmr.msra.gmra.mxu0 %vm2459_vm6, %v2499_v14  ;;  %3605 = vmatpush3.bf16.msra.mxu1 %v3860_v56 }
 0x543   : > { %3616 = vmatprep.mubr.msk.bf16.mxu0 %vm4282_vm2, %v4281_v55  ;;  %3606 = vmatprep.subr.bf16.mxu1 %v4281_v55 }
 0x546   : > { %3607 = vmatpush3.bf16.msra.mxu1 %v3861_v54 }
 0x547   : > { %3620 = vmatprep.subr.bf16.mxu1 %v4281_v55 }
 0x5b8   : > { %v2486_v59 = vpop.xlane.xlu0 %2485 }
 0x5b9   : > { %3876 = vrcp.f32 %v2486_v59 }
 0x5ba   : > { %v2489_v9 = vpop.xlane.xlu1 %2488 }
 0x5c6   : > { %v3877_v40 = vpop.eup %3876 }
 0x5c8   : > { %v2492_v63 = vpop.xlane.xlu0 %2491 }
 0x5c9   : > { %3878 = vrcp.f32 %v2492_v63 }
 0x5ca   : > { %v2495_v58 = vpop.xlane.xlu1 %2494  ;;  %3880 = vrcp.f32 %v2489_v9 }
 0x5cb   : > { %3882 = vrcp.f32 %v2495_v58 }
 0x5d6   : > { %v3879_v41 = vpop.eup %3878 }
 0x5d7   : > { %v3881_v45 = vpop.eup %3880 }
 0x5d8   : > { %v3883_v7 = vpop.eup %3882 }
 0x5f0   : > { %v2562_v27 = vpop.f32.mrf.mxu1 }
 0x5f1   : > { %v2737_v8 = vmul.f32 %v3877_v40, %v2562_v27 }
 0x5f2   : > { %v3578_v16 = vpop.f32.mrf.mxu1  ;;  %v2617_v29 = vpop.f32.mrf.mxu0 }
 0x5f3   : > { %v2738_v61 = vmul.f32 %v3881_v45, %v2617_v29 }
 0x5f4   : > { %v2565_v11 = vpop.f32.mrf.mxu1  ;;  %v3586_v19 = vpop.f32.mrf.mxu0 }
 0x5f6   : > { %v3579_v1 = vpop.f32.mrf.mxu1  ;;  %v2620_v34 = vpop.f32.mrf.mxu0 }
 0x5f7   : > { %v3448_v34 = vld [vmem:[#allocation18] ss:$0 sm:$0xff] }
 0x5f8   : > { %v3587_v38 = vpop.f32.mrf.mxu0 }
 0x600   : > { %v2672_v43 = vpop.f32.mrf.mxu1 }
 0x601   : > { %v2739_v49 = vmul.f32 %v3879_v41, %v2672_v43 }
 0x602   : > { %v3594_v15 = vpop.f32.mrf.mxu1  ;;  %v2727_v28 = vpop.f32.mrf.mxu0 }
 0x603   : > { %v2741_v44 = vcombine.low %v2737_v8, %v2739_v49  ;;  %v2742_v48 = vcombine.high %v2737_v8, %v2739_v49  ;;  %v2740_v12 = vmul.f32 %v3883_v7, %v2727_v28 }
 0x604   : > { %v2675_v21 = vpop.f32.mrf.mxu1  ;;  %v3602_v23 = vpop.f32.mrf.mxu0 }
 0x605   : > { %v2757_v24 = vcombine.low %v2738_v61, %v2740_v12  ;;  %v2758_v25 = vcombine.high %v2738_v61, %v2740_v12  ;;  %v2749_v26 = vrot.slane %v2741_v44, %v4996_v18  ;;  %v2756_v30 = vrot.slane %v2742_v48, %v4996_v18  ;;  %v3862_v48 = vld [vmem:[%s5213_s12 + $0x8] sm:$0xff]   ;;  %v3864_v12 = vld [vmem:[%s5215_s14 + $0x18] sm:$0xff]   ;;  %v3865_v21 = vld [vmem:[%s5215_s14 + $0x10] sm:$0xff]  }
 0x606   : > { %v3595_v2 = vpop.f32.mrf.mxu1  ;;  %v2730_v46 = vpop.f32.mrf.mxu0  ;;  %3613 = vmatpush3.bf16.msra.mxu0 %v3862_v48 }
 0x607   : > { %v2765_v31 = vrot.slane %v2757_v24, %v4996_v18  ;;  %v2772_v51 = vrot.slane %v2758_v25, %v4996_v18  ;;  %3614 = vmatprep.subr.bf16.mxu0 %v4281_v55  ;;  %v3452_v46 = vld [vmem:[%s5283_s18] ss:$0 sm:$0xff]  ;;  %s3634_s18 = smul.u32 3, %s4248_s20  ;;  %s5289_s20 = sld [smem:[#allocation47_spill]] }
 0x608   : > { %v3603_v62 = vpop.f32.mrf.mxu0 }
 0x609   : > { %v2773_v32 = vcombine.low %v2749_v26, %v2765_v31  ;;  %v2774_v47 = vcombine.high %v2749_v26, %v2765_v31  ;;  %v2789_v60 = vcombine.low %v2756_v30, %v2772_v51  ;;  %v2790_v0 = vcombine.high %v2756_v30, %v2772_v51 }
 0x60b   : > { %v2781_v3 = vrot.slane %v2773_v32, %v4999_v5  ;;  %v2788_v36 = vrot.slane %v2774_v47, %v4999_v5  ;;  %v2797_v42 = vrot.slane %v2789_v60, %v4999_v5  ;;  %v2804_v22 = vrot.slane %v2790_v0, %v4999_v5  ;;  %v3866_v32 = vld [vmem:[%s5215_s14 + $0x8] sm:$0xff]   ;;  %v3867_v47 = vld [vmem:[%s5215_s14] sm:$0xff]  }
 0x60c   : > { %v3454_v60 = vld [vmem:[%s5285_s30] ss:$0 sm:$0xff] }
 0x60d   : > { %v2809_v33 = vcombine.low %v2781_v3, %v2788_v36  ;;  %v3446_v50 = vcombine.high %v2781_v3, %v2788_v36  ;;  %v2825_v4 = vcombine.low %v2797_v42, %v2804_v22  ;;  %v3447_v57 = vcombine.high %v2797_v42, %v2804_v22 }
 0x60f   : > { %v2816_v17 = vrot.slane %v2809_v33, %v4996_v18  ;;  %v2824_v52 = vrot.slane %v3446_v50, %v4996_v18  ;;  %v2832_v6 = vrot.slane %v2825_v4, %v4996_v18  ;;  %v2840_v10 = vrot.slane %v3447_v57, %v4996_v18 }
 0x611   : > { %v2842_v35 = vcombine.high %v2816_v17, %v2824_v52  ;;  %v2858_v53 = vcombine.high %v2832_v6, %v2840_v10  ;;  %v2841_v20 = vcombine.low %v2816_v17, %v2824_v52  ;;  %v2857_v39 = vcombine.low %v2832_v6, %v2840_v10 }
 0x613   : > { %v2856_v37 = vrot.slane %v2842_v35, %v4999_v5  ;;  %v2872_v14 = vrot.slane %v2858_v53, %v4999_v5  ;;  %v2849_v56 = vrot.slane %v2841_v20, %v4999_v5  ;;  %v2865_v59 = vrot.slane %v2857_v39, %v4999_v5 }
 0x615   : > { %v2875_v9 = vcombine.low %v2856_v37, %v2872_v14  ;;  %v2874_v63 = vcombine.high %v2849_v56, %v2865_v59  ;;  %v2873_v27 = vcombine.low %v2849_v56, %v2865_v59  ;;  %v2876_v18 = vcombine.high %v2856_v37, %v2872_v14 }
 0x617   : > { %2882 = vrot.lane.b32.xlu1 %v2875_v9, %s4289_s29  ;;  %2878 = vrot.lane.b32.xlu0 %v2874_v63, %s4290_s26  ;;  %s3186_s29 = sadd.s32 %s4244_s1, %s3634_s18  ;;  %v3464_v63 = vld [vmem:[%s5287_s23] ss:$0 sm:$0xff]  ;;  %s3175_s1 = scalar_lea.sflag [#allocation6], %s711_s21 }
 0x618   : > { %s3467_s6 = sshll.u32 %s3186_s29, 7  ;;  %s4124_s18 = scalar_lea.vmem %s3191_s16, 128 }
 0x619   : > { %s3188_s27 = scalar_lea.hbm %s5289_s20, %s3467_s6  ;;  %p4125_p11 = scmp.ne.s32.totalorder %s3191_s16, %s4124_s18 }
 0x61a   : > { %s4292_s29 = smov [#allocation19]  }
 0x61b   : > { %2886 = vrot.lane.b32.xlu1 %v2876_v18, %s4291_s15  ;;  %s5284_s15 = sld [smem:[#allocation42_spill]]  ;;  %v3465_v18 = vld [vmem:[%s5288_s22] ss:$0 sm:$0xff]  ;;  %p4126_p10 = pnand %p4125_p11, %p5291_p6 }
 0x61c   : > { %s4128_s26 = sshll.u32 %s4292_s29, 4  ;;  %s4129_s26 = int_to_ptr.vmem [resolvable:$false] %s4128_s26 }
 0x61d   : > { %p4127_p12 = pneg %p4126_p10  ;;  %p4131_p5 = scmp.lt.s32.totalorder %s3191_s16, %s4129_s26 }
 0x621   : > { %v3453_v30 = vld [vmem:[%s5284_s15] ss:$0 sm:$0xff]  ;;  %s4130_s15 = scalar_lea.vmem %s4129_s26, 256 }
 0x622   : > { %p4132_p1 = scmp.lt.s32.totalorder %s4130_s15, %s4124_s18 }
 0x624   : > { %p4133_p8 = por %p4132_p1, %p4131_p5 }
 0x626   : > { %p4134_p0 = pnand %p4133_p8, %p4127_p12 }
 0x689   : > { %v2883_v58 = vpop.permute.xlu1 %2882  ;;  %v2879_v16 = vpop.permute.xlu0 %2878 }
 0x68a   : > { %v2889_v29 = vsel %vm2229_vm4, %v2873_v27, %v2879_v16 }
 0x68b   : > { %v2891_v19 = vsel %vm2890_vm8, %v2889_v29, %v2883_v58 }
 0x68d   : > { %v2887_v11 = vpop.permute.xlu1 %2886 }
 0x68e   : > { %v2892_v1 = vsel %vm2459_vm6, %v2891_v19, %v2887_v11 }
 0x68f   : > { %v2893_v5 = vpack.c.bf16 %v2892_v1, %v2892_v1 }
 0x691   : > { %3609 = vmatmul.mubr.msk.bf16.vlgmr.msra.gmra.mxu1 %vm1995_vm3, %v2893_v5 }
 0x692   : > { %3628 = vmatprep.mubr.msk.bf16.mxu1 %vm4282_vm2, %v4281_v55  ;;  %3621 = vmatpush3.bf16.msra.mxu1 %v3864_v12 }
 0x693   : > { %3622 = vmatprep.subr.bf16.mxu1 %v4281_v55 }
 0x696   : > { %3623 = vmatpush3.bf16.msra.mxu1 %v3865_v21 }
 0x697   : > { %3624 = vmatprep.subr.bf16.mxu1 %v4281_v55 }
 0x69a   : > { %3625 = vmatpush3.bf16.msra.mxu1 %v3866_v32 }
 0x69b   : > { %3626 = vmatprep.subr.bf16.mxu1 %v4281_v55  ;;  %v3458_v55 = vld [vmem:[%s5286_s4] ss:$0 sm:$0xff]  ;;  %s5290_s4 = smov %s5289_s20 }
 0x69e   : > { %3627 = vmatpush3.bf16.msra.mxu1 %v3867_v47 }
 0x751   : > { %v2954_v38 = vpop.f32.mrf.mxu1 }
 0x752   : > { %v2955_v40 = vadd.f32 %v3448_v34, %v2954_v38 }
 0x753   : > { %v3610_v41 = vpop.f32.mrf.mxu1 }
 0x754   : > { %v2960_v43 = vadd.f32 %v2955_v40, %v4980_v13  ;;  %v3863_v13 = vld [vmem:[%s5213_s12] sm:$0xff]  }
 0x755   : > { %v2957_v45 = vpop.f32.mrf.mxu1  ;;  %3615 = vmatpush3.bf16.msra.mxu0 %v3863_v13 }
 0x756   : > { %v2961_v8 = vsel %vm1995_vm3, %v2960_v43, 0.0 }
 0x757   : > { %2962 = vadd.xlane.f32.xlu0 %v2961_v8  ;;  %v3611_v49 = vpop.f32.mrf.mxu1 }
 0x7e0   : > { %v2963_v7 = vpop.xlane.xlu0 %2962 }
 0x7e1   : > { %v2965_v15 = vmul.f32 0.03125, %v2963_v7 }
 0x7e3   : > { %v2966_v28 = vsub.f32 %v2960_v43, %v2965_v15 }
 0x7e5   : > { %v2967_v61 = vmul.f32 %v2966_v28, %v2966_v28 }
 0x7e7   : > { %v2968_v44 = vsel %vm1995_vm3, %v2967_v61, 0.0 }
 0x7e8   : > { %2969 = vadd.xlane.f32.xlu1 %v2968_v44 }
 0x871   : > { %v2970_v23 = vpop.xlane.xlu1 %2969 }
 0x872   : > { %v2971_v24 = vmul.f32 0.03125, %v2970_v23 }
 0x874   : > { %v2972_v25 = vadd.f32 1e-05, %v2971_v24 }
 0x876   : > { %3884 = vrsqrt.f32 %v2972_v25 }
 0x883   : > { %v3885_v2 = vpop.eup %3884 }
 0x884   : > { %v2974_v26 = vmul.f32 %v3885_v2, %v2966_v28 }
 0x886   : > { %v2982_v31 = vmul.f32 %v3452_v46, %v2974_v26 }
 0x888   : > { %v2990_v51 = vadd.f32 %v3453_v30, %v2982_v31 }
 0x88a   : > { %v2991_v62 = vpack.c.bf16 %v2990_v51, %v2990_v51 }
 0x88c   : > { %3617 = vmatmul.mubr.msk.bf16.vlgmr.msra.gmra.mxu0 %vm1995_vm3, %v2991_v62 }
 0x94c   : > { %v3052_v0 = vpop.f32.mrf.mxu0 }
 0x94d   : > { %v3053_v54 = vadd.f32 %v3454_v60, %v3052_v0 }
 0x94e   : > { %v3618_v3 = vpop.f32.mrf.mxu0 }
 0x94f   : > { %v3058_v36 = vmax.f32 %v3053_v54, 0.0 }
 0x950   : > { %v3055_v42 = vpop.f32.mrf.mxu0 }
 0x951   : > { %v3059_v22 = vpack.c.bf16 %v3058_v36, %v3058_v36 }
 0x952   : > { %v3619_v33 = vpop.f32.mrf.mxu0 }
 0x953   : > { %3629 = vmatmul.mubr.msk.bf16.vlgmr.msra.gmra.mxu1 %vm3099_vm9, %v3059_v22 }
 0xa13   : > { %v3137_v50 = vpop.f32.mrf.mxu1 }
 0xa14   : > { %v3138_v4 = vadd.f32 %v3458_v55, %v3137_v50 }
 0xa15   : > { %v3630_v57 = vpop.f32.mrf.mxu1 }
 0xa16   : > { %v3143_v17 = vadd.f32 %v3138_v4, %v2990_v51 }
 0xa17   : > { %v3140_v52 = vpop.f32.mrf.mxu1 }
 0xa18   : > { %v3144_v6 = vsel %vm1995_vm3, %v3143_v17, 0.0 }
 0xa19   : > { %3145 = vadd.xlane.f32.xlu0 %v3144_v6  ;;  %v3631_v10 = vpop.f32.mrf.mxu1 }
 0xaa2   : > { %v3146_v35 = vpop.xlane.xlu0 %3145 }
 0xaa3   : > { %v3147_v53 = vmul.f32 0.03125, %v3146_v35 }
 0xaa5   : > { %v3148_v20 = vsub.f32 %v3143_v17, %v3147_v53 }
 0xaa7   : > { %v3149_v39 = vmul.f32 %v3148_v20, %v3148_v20 }
 0xaa9   : > { %v3150_v37 = vsel %vm1995_vm3, %v3149_v39, 0.0 }
 0xaaa   : > { %3151 = vadd.xlane.f32.xlu0 %v3150_v37 }
 0xb33   : > { %v3152_v14 = vpop.xlane.xlu0 %3151 }
 0xb34   : > { %v3153_v56 = vmul.f32 0.03125, %v3152_v14 }
 0xb36   : > { %v3154_v59 = vadd.f32 1e-05, %v3153_v56 }
 0xb38   : > { %3886 = vrsqrt.f32 %v3154_v59 }
 0xb45   : > { %v3887_v9 = vpop.eup %3886 }
 0xb46   : > { %v3156_v27 = vmul.f32 %v3887_v9, %v3148_v20 }
 0xb48   : > { %v3164_v58 = vmul.f32 %v3464_v63, %v3156_v27 }
 0xb4a   : > { %v3172_v16 = vadd.f32 %v3465_v18, %v3164_v58 }
 0xb4c   : > { %3173 = vst.msk [vmem:[%s713_s11] sm:$0xff] %vm1995_vm3, %v3172_v16 }
 0xb4d   : > { %4137 = shalt.err (!%p4134_p0)
}
 0xb4e   : > { %s4138_s23 = scalar_lea.hbm %s3188_s27, 128  ;;  %s4142_s11 = scalar_lea.hbm %s5290_s4, 768 }
 0xb4f   : > { %p4139_p13 = scmp.ne.s32.totalorder %s3188_s27, %s4138_s23  ;;  %p4143_p7 = scmp.lt.s32.totalorder %s3188_s27, %s5290_s4 }
 0xb50   : > { %p4144_p9 = scmp.lt.s32.totalorder %s4142_s11, %s4138_s23 }
 0xb51   : > { %p4140_p2 = pnand %p4139_p13, %p5291_p6 }
 0xb52   : > { %p4145_p4 = por %p4144_p9, %p4143_p7 }
 0xb53   : > { %p4141_p3 = pneg %p4140_p2 }
 0xb55   : > { %p4146_p11 = pnand %p4145_p4, %p4141_p3 }
 0xb57   : > { %4149 = shalt.err (!%p4146_p11)
}
 0xb58   : > { %3669 = dma.vmem_to_hbm [thread:$0]  (%p5291_p6), %s3191_s16, 128, %s3188_s27, %s3175_s1  }
 0xb59 PF: > { %s5292_s22 = sld [smem:[#allocation26_spill]]  ;;  %p3719_p10 = scmp.ge.s32.totalorder %s4260_s2, 2 }
 0xb5a   : > { %s5293_s6 = sld [smem:[#allocation33_spill]] }
 0xb5f   : > { %s3202_s30 = sand.u32 1, %s5292_s22  }
 0xb60   : > { %p5294_p12 = scmp.ne.s32.totalorder %s5293_s6, 0  ;;  %s3203_s19 = scalar_lea.sflag [#allocation6], %s3202_s30 }
 0xb62   : > { %p3700_p5 = pnand %p3719_p10, %p5294_p12 }
 0xb64   : > { %p3701_p1 = pneg %p3700_p5 }
 0xb66   : > { %4215 = dma.done.wait (%p3701_p1), %s3203_s19, 128  }
 0xb67   : > { %4217 = vsyncadd (%p3701_p1), %s3203_s19, 4294967168  ;;  %s36_s2 = sadd.s32 1, %s4260_s2   ;;  %s5295_s20 = sld [smem:[#allocation27_spill]] }
 0xb68   : > { %p33_p8 = scmp.ge.s32.totalorder %s36_s2, 8   ;;  %s5296_s29 = sld [smem:[#allocation35_spill]] }
 0xb69   : > { %s5297_s13 = sld [smem:[#allocation28_spill]]  ;;  %s5303_s27 = smov %s4224_s28 }
 0xb6a   : > { %s5298_s19 = sld [smem:[#allocation34_spill]]  ;;  %s5305_s30 = smov %s4236_s0 }
 0xb6b   : > { %s5299_s1 = sld [smem:[#allocation29_spill]] }
 0xb6c   : > { %s5300_s16 = sld [smem:[#allocation30_spill]] }
 0xb6d   : > { %s5301_s21 = sld [smem:[#allocation31_spill]]  ;;  %s5304_s28 = smov %s5295_s20 }
 0xb6e   : > { %s5302_s22 = sld [smem:[#allocation32_spill]]  ;;  %35 = sbr.rel (!%p33_p8) target bundleno = 25 (0x19), region = 171 }
 0xb6f   : > { %s5306_s0 = smov %s5297_s13 }
 0xb72   : > { %s5307_s20 = smov %s5300_s16 }
 0xb73   :  { %3208 = vsyncpa [#allocation5], 1 }
 0xb74   :  { %3210 = vsyncpa [#allocation5 + $0x1], 1 }
 0xb75   :  { %3211 = vsyncpa [#allocation8], 1 }
 0xb76   :  { %3212 = vsyncpa [#allocation11], 1 }
 0xb77   :  { %3213 = vsyncpa [#allocation14], 1 }
 0xb78   :  { %3214 = vsyncpa [#allocation17], 1 }
 0xb79   :  { %3215 = vsyncpa [#allocation6], 1 }
 0xb7a   :  { %3217 = vsyncpa [#allocation6 + $0x1], 1 }

</bundles_post_ra>
